<compile_context>
chip_gen: v6e
topology: v6e:2x2x1
jax: 0.10.0
libtpu: 0.0.40
codegen_flags: <defaults>
</compile_context>

<pallas_src>
import jax
import jax.numpy as jnp
from jax.experimental import pallas as pl
from jax.experimental.pallas import tpu as pltpu


def temporal_fusion_kernel(wf_ref, bf_ref, wa_ref, ba_ref, x_ref, out_ref):
    # wf_ref : SMEM (3*C*C,)  fusion conv weights, flat index = dt*C*C + ci*C + co
    # bf_ref : SMEM (C,)      fusion conv bias
    # wa_ref : SMEM (3*C,)    attention conv weights, flat index = dt*C + ci
    # ba_ref : SMEM (1,)      attention conv bias
    # x_ref  : VMEM (1, C*T, TILE_HW)   channel-major: rows [ci*T : (ci+1)*T] = frames of channel ci
    # out_ref: VMEM (1, C, TILE_HW)
    CT = x_ref.shape[1]
    C = out_ref.shape[1]
    T = CT // C
    HW = x_ref.shape[2]

    zero_row = jnp.zeros((1, HW), jnp.float32)

    # ---- attention conv, channel reduction first ------------------------------
    #   q_dt[t] = sum_ci wa[dt,ci] * x[ci, t]
    q0 = jnp.zeros((T, HW), jnp.float32)
    q1 = jnp.zeros((T, HW), jnp.float32)
    q2 = jnp.zeros((T, HW), jnp.float32)
    xs = []                                               # f32 copies, reused below
    for ci in range(C):
        xc = x_ref[0, ci * T:(ci + 1) * T, :].astype(jnp.float32)   # (T, HW)
        xs.append(xc)
        q0 = q0 + wa_ref[0 * C + ci] * xc
        q1 = q1 + wa_ref[1 * C + ci] * xc
        q2 = q2 + wa_ref[2 * C + ci] * xc

    # Temporal kernel (3,1,1) with zero padding 1:
    #   attn[t] = q0[t-1] + q1[t] + q2[t+1] + ba          (out-of-range q == 0)
    attn = (jnp.concatenate([zero_row, q0[:T - 1]], axis=0)
            + q1
            + jnp.concatenate([q2[1:], zero_row], axis=0)
            + ba_ref[0])                                  # (T, HW)

    # ---- softmax over the temporal axis (dim=2 in the PyTorch layout) --------
    m = jnp.max(attn, axis=0, keepdims=True)              # (1, HW)
    e = jnp.exp(attn - m)                                 # (T, HW)
    denom = jnp.sum(e, axis=0, keepdims=True)             # (1, HW)
    w = e * pl.reciprocal(denom, approx=True)             # (T, HW)  EUP divide

    # Shifted softmax weights so that  s[ci,dt] = sum_t w[t]*x[ci, t+dt-1]
    #                                           = sum_t w_dt[t]*x[ci, t]:
    #   dt=0: w0[t] = w[t+1] (w0[T-1]=0);  dt=1: w;  dt=2: w2[t] = w[t-1] (w2[0]=0)
    w0 = jnp.concatenate([w[1:], zero_row], axis=0)        # (T, HW)
    w2 = jnp.concatenate([zero_row, w[:T - 1]], axis=0)    # (T, HW)

    # ---- fusion conv folded into the softmax-weighted temporal sum -----------
    # out[co] = sum_{ci,dt} wf[dt,ci,co] * s[ci,dt] + bf[co]
    # (the fusion bias can be added once because the softmax weights sum to 1)
    acc = [jnp.zeros((1, HW), jnp.float32) for _ in range(C)]
    for ci in range(C):
        xc = xs[ci]
        s0 = jnp.sum(w0 * xc, axis=0, keepdims=True)       # (1, HW)
        s1 = jnp.sum(w * xc, axis=0, keepdims=True)
        s2 = jnp.sum(w2 * xc, axis=0, keepdims=True)
        for co in range(C):
            acc[co] = (acc[co]
                       + wf_ref[0 * C * C + ci * C + co] * s0
                       + wf_ref[1 * C * C + ci * C + co] * s1
                       + wf_ref[2 * C * C + ci * C + co] * s2)

    # Per-row stores (no concatenate through the XLU).
    for co in range(C):
        out_ref[0, co:co + 1, :] = (acc[co] + bf_ref[co]).astype(out_ref.dtype)


_TILE_CANDIDATES = (16384, 8192, 4096, 2048, 1024, 512, 256, 128)


def _pick_tile_hw(hw, *, c, t, in_bytes, vmem_budget_bytes=20 << 20):
    """Largest lane-dense tile (multiple of 128) that fits a conservative VMEM
    budget (double-buffered in/out blocks + in-kernel f32 intermediates).
    Never returns a full-HW fallback block — the wrapper pads HW instead."""
    hw128 = ((hw + 127) // 128) * 128
    # bytes per lane column: 2x input block + 2x output block (double-buffered)
    # + f32 intermediates (xs copies, q/attn/e/w/w0/w2 rows, C accumulators).
    per_lane = (2 * c * t + 2 * c) * in_bytes + (c * t + 8 * t + 4 * c) * 4
    for tile in _TILE_CANDIDATES:
        if tile > hw128:
            continue
        if tile * per_lane <= vmem_budget_bytes:
            return tile
    return 128


def temporal_fusion(x, wf, bf, wa, ba, *, tile_hw=None):
    """x: (N, C, T, H, W) -> (N, C, H, W).

    wf: (3, C, C)  [kt, c_in, c_out]   (a PyTorch Conv3d weight (Cout, Cin, 3, 1, 1)
    bf: (1, C)                          maps here via .squeeze(-1).squeeze(-1)
    wa: (3, C, 1)  [kt, c_in, 1]        .transpose(2, 1, 0))
    ba: (1, 1)
    """
    N, C, T, H, W = x.shape
    HW = H * W
    in_bytes = jnp.dtype(x.dtype).itemsize
    if tile_hw is None:
        tile_hw = _pick_tile_hw(HW, c=C, t=T, in_bytes=in_bytes)

    num_tiles = pl.cdiv(HW, tile_hw)
    HW_pad = num_tiles * tile_hw

    # Pure reshape (no transpose); channel-major rows give a 32-row slab that
    # packs cleanly into sublane tiles for both f32 and bf16 inputs.
    xk = x.reshape(N, C * T, HW)
    if HW_pad != HW:
        # Zero-pad the tail so every block is a fixed lane-dense tile; padded
        # columns produce bf[co] in the output and are cropped below.
        xk = jnp.pad(xk, ((0, 0), (0, 0), (0, HW_pad - HW)))

    # Host-side weight flattening: tiny, grid-invariant, lives in SMEM.
    wf_flat = wf.reshape(-1).astype(jnp.float32)   # (3*C*C,)
    bf_flat = bf.reshape(-1).astype(jnp.float32)   # (C,)
    wa_flat = wa.reshape(-1).astype(jnp.float32)   # (3*C,)
    ba_flat = ba.reshape(-1).astype(jnp.float32)   # (1,)

    out = pl.pallas_call(
        temporal_fusion_kernel,
        out_shape=jax.ShapeDtypeStruct((N, C, HW_pad), x.dtype),
        grid=(N, num_tiles),
        in_specs=[
            pl.BlockSpec(memory_space=pltpu.MemorySpace.SMEM),
            pl.BlockSpec(memory_space=pltpu.MemorySpace.SMEM),
            pl.BlockSpec(memory_space=pltpu.MemorySpace.SMEM),
            pl.BlockSpec(memory_space=pltpu.MemorySpace.SMEM),
            pl.BlockSpec((1, C * T, tile_hw), lambda n, s: (n, 0, s)),
        ],
        out_specs=pl.BlockSpec((1, C, tile_hw), lambda n, s: (n, 0, s)),
        compiler_params=pltpu.CompilerParams(
            dimension_semantics=("parallel", "parallel"),
            vmem_limit_bytes=32 * 1024 * 1024),
    )(wf_flat, bf_flat, wa_flat, ba_flat, xk)

    if HW_pad != HW:
        out = out[:, :, :HW]
    return out.reshape(N, C, H, W)


def temporal_fusion_reference(x, wf, bf, wa, ba):
    """Pure-JAX reference mirroring the PyTorch forward (NCTHW)."""
    N, C, T, H, W = x.shape
    xpad = jnp.pad(x, ((0, 0), (0, 0), (1, 1), (0, 0), (0, 0)))
    feat = jnp.zeros((N, C, T, H, W), jnp.float32)
    attn = jnp.zeros((N, 1, T, H, W), jnp.float32)
    for dt in range(3):
        xs = xpad[:, :, dt:dt + T]                              # (N, C, T, H, W)
        feat = feat + jnp.einsum('ncthw,cd->ndthw', xs, wf[dt])
        attn = attn + jnp.einsum('ncthw,cd->ndthw', xs, wa[dt])
    feat = feat + bf.reshape(1, C, 1, 1, 1)
    attn = attn + ba.reshape(1, 1, 1, 1, 1)
    w = jax.nn.softmax(attn, axis=2)
    return jnp.sum(feat * w, axis=2)


if __name__ == "__main__":
    # Small shapes consistent with the module: batch=2, channels=4, seq(T)=8, spatial=16
    N, C, T, H, W = 2, 4, 8, 16, 16

    key = jax.random.PRNGKey(0)
    kx, kwf, kbf, kwa, kba = jax.random.split(key, 5)

    x = jax.random.normal(kx, (N, C, T, H, W), dtype=jnp.float32)

    # Synthetic parameters stored as (kT, Cin, Cout); a real PyTorch Conv3d weight
    # (Cout, Cin, kT, 1, 1) must be permuted to this layout by the caller.
    wf = 0.1 * jax.random.normal(kwf, (3, C, C), dtype=jnp.float32)
    bf = 0.1 * jax.random.normal(kbf, (1, C), dtype=jnp.float32)
    wa = 0.1 * jax.random.normal(kwa, (3, C, 1), dtype=jnp.float32)
    ba = 0.1 * jax.random.normal(kba, (1, 1), dtype=jnp.float32)

    out = jax.block_until_ready(temporal_fusion(x, wf, bf, wa, ba))
    ref = jax.block_until_ready(temporal_fusion_reference(x, wf, bf, wa, ba))

    assert out.shape == (N, C, H, W), out.shape
    err = float(jnp.max(jnp.abs(out - ref)))
    # approx=True softmax reciprocal -> allow a slightly looser tolerance
    assert jnp.allclose(out, ref, atol=2e-3, rtol=2e-3), err

    print("KERNEL_OK")
</pallas_src>

<mosaic_0001>
module attributes {stable_mosaic.version = 11 : i64} {
  func.func @temporal_fusion_kernel(%arg0: i32, %arg1: i32, %arg2: memref<48xf32, #tpu.memory_space<smem>>, %arg3: memref<4xf32, #tpu.memory_space<smem>>, %arg4: memref<12xf32, #tpu.memory_space<smem>>, %arg5: memref<1xf32, #tpu.memory_space<smem>>, %arg6: memref<1x32x256xf32, #tpu.memory_space<vmem>>, %arg7: memref<1x4x256xf32, #tpu.memory_space<vmem>>) attributes {dimension_semantics = [#tpu.dimension_semantics<parallel>, #tpu.dimension_semantics<parallel>], iteration_bounds = array<i64: 2, 1>, scalar_prefetch = 0 : i64, scratch_operands = 0 : i64, tpu.core_type = #tpu.core_type<tc>, window_params = [{transform_indices = @transform_0, window_bounds = array<i64: 48>}, {transform_indices = @transform_1, window_bounds = array<i64: 4>}, {transform_indices = @transform_2, window_bounds = array<i64: 12>}, {transform_indices = @transform_3, window_bounds = array<i64: 1>}, {transform_indices = @transform_4, window_bounds = array<i64: 1, 32, 256>}, {transform_indices = @transform_5, window_bounds = array<i64: 1, 4, 256>}]} {
    %cst = arith.constant 0.000000e+00 : f32
    %0 = vector.broadcast %cst : f32 to vector<1x256xf32>
    %cst_0 = arith.constant 0.000000e+00 : f32
    %1 = vector.broadcast %cst_0 : f32 to vector<8x256xf32>
    %cst_1 = arith.constant 0.000000e+00 : f32
    %2 = vector.broadcast %cst_1 : f32 to vector<8x256xf32>
    %cst_2 = arith.constant 0.000000e+00 : f32
    %3 = vector.broadcast %cst_2 : f32 to vector<8x256xf32>
    %c0 = arith.constant 0 : index
    %c0_3 = arith.constant 0 : index
    %c0_4 = arith.constant 0 : index
    %4 = vector.load %arg6[%c0, %c0_3, %c0_4] : memref<1x32x256xf32, #tpu.memory_space<vmem>>, vector<1x8x256xf32>
    %5 = vector.shape_cast %4 : vector<1x8x256xf32> to vector<8x256xf32>
    %c0_5 = arith.constant 0 : index
    %6 = memref.load %arg4[%c0_5] : memref<12xf32, #tpu.memory_space<smem>>
    %7 = vector.broadcast %6 : f32 to vector<8x256xf32>
    %8 = arith.mulf %7, %5 : vector<8x256xf32>
    %9 = arith.addf %1, %8 : vector<8x256xf32>
    %c4 = arith.constant 4 : index
    %10 = memref.load %arg4[%c4] : memref<12xf32, #tpu.memory_space<smem>>
    %11 = vector.broadcast %10 : f32 to vector<8x256xf32>
    %12 = arith.mulf %11, %5 : vector<8x256xf32>
    %13 = arith.addf %2, %12 : vector<8x256xf32>
    %c8 = arith.constant 8 : index
    %14 = memref.load %arg4[%c8] : memref<12xf32, #tpu.memory_space<smem>>
    %15 = vector.broadcast %14 : f32 to vector<8x256xf32>
    %16 = arith.mulf %15, %5 : vector<8x256xf32>
    %17 = arith.addf %3, %16 : vector<8x256xf32>
    %c0_6 = arith.constant 0 : index
    %c8_7 = arith.constant 8 : index
    %c0_8 = arith.constant 0 : index
    %18 = vector.load %arg6[%c0_6, %c8_7, %c0_8] : memref<1x32x256xf32, #tpu.memory_space<vmem>>, vector<1x8x256xf32>
    %19 = vector.shape_cast %18 : vector<1x8x256xf32> to vector<8x256xf32>
    %c1 = arith.constant 1 : index
    %20 = memref.load %arg4[%c1] : memref<12xf32, #tpu.memory_space<smem>>
    %21 = vector.broadcast %20 : f32 to vector<8x256xf32>
    %22 = arith.mulf %21, %19 : vector<8x256xf32>
    %23 = arith.addf %9, %22 : vector<8x256xf32>
    %c5 = arith.constant 5 : index
    %24 = memref.load %arg4[%c5] : memref<12xf32, #tpu.memory_space<smem>>
    %25 = vector.broadcast %24 : f32 to vector<8x256xf32>
    %26 = arith.mulf %25, %19 : vector<8x256xf32>
    %27 = arith.addf %13, %26 : vector<8x256xf32>
    %c9 = arith.constant 9 : index
    %28 = memref.load %arg4[%c9] : memref<12xf32, #tpu.memory_space<smem>>
    %29 = vector.broadcast %28 : f32 to vector<8x256xf32>
    %30 = arith.mulf %29, %19 : vector<8x256xf32>
    %31 = arith.addf %17, %30 : vector<8x256xf32>
    %c0_9 = arith.constant 0 : index
    %c16 = arith.constant 16 : index
    %c0_10 = arith.constant 0 : index
    %32 = vector.load %arg6[%c0_9, %c16, %c0_10] : memref<1x32x256xf32, #tpu.memory_space<vmem>>, vector<1x8x256xf32>
    %33 = vector.shape_cast %32 : vector<1x8x256xf32> to vector<8x256xf32>
    %c2 = arith.constant 2 : index
    %34 = memref.load %arg4[%c2] : memref<12xf32, #tpu.memory_space<smem>>
    %35 = vector.broadcast %34 : f32 to vector<8x256xf32>
    %36 = arith.mulf %35, %33 : vector<8x256xf32>
    %37 = arith.addf %23, %36 : vector<8x256xf32>
    %c6 = arith.constant 6 : index
    %38 = memref.load %arg4[%c6] : memref<12xf32, #tpu.memory_space<smem>>
    %39 = vector.broadcast %38 : f32 to vector<8x256xf32>
    %40 = arith.mulf %39, %33 : vector<8x256xf32>
    %41 = arith.addf %27, %40 : vector<8x256xf32>
    %c10 = arith.constant 10 : index
    %42 = memref.load %arg4[%c10] : memref<12xf32, #tpu.memory_space<smem>>
    %43 = vector.broadcast %42 : f32 to vector<8x256xf32>
    %44 = arith.mulf %43, %33 : vector<8x256xf32>
    %45 = arith.addf %31, %44 : vector<8x256xf32>
    %c0_11 = arith.constant 0 : index
    %c24 = arith.constant 24 : index
    %c0_12 = arith.constant 0 : index
    %46 = vector.load %arg6[%c0_11, %c24, %c0_12] : memref<1x32x256xf32, #tpu.memory_space<vmem>>, vector<1x8x256xf32>
    %47 = vector.shape_cast %46 : vector<1x8x256xf32> to vector<8x256xf32>
    %c3 = arith.constant 3 : index
    %48 = memref.load %arg4[%c3] : memref<12xf32, #tpu.memory_space<smem>>
    %49 = vector.broadcast %48 : f32 to vector<8x256xf32>
    %50 = arith.mulf %49, %47 : vector<8x256xf32>
    %51 = arith.addf %37, %50 : vector<8x256xf32>
    %c7 = arith.constant 7 : index
    %52 = memref.load %arg4[%c7] : memref<12xf32, #tpu.memory_space<smem>>
    %53 = vector.broadcast %52 : f32 to vector<8x256xf32>
    %54 = arith.mulf %53, %47 : vector<8x256xf32>
    %55 = arith.addf %41, %54 : vector<8x256xf32>
    %c11 = arith.constant 11 : index
    %56 = memref.load %arg4[%c11] : memref<12xf32, #tpu.memory_space<smem>>
    %57 = vector.broadcast %56 : f32 to vector<8x256xf32>
    %58 = arith.mulf %57, %47 : vector<8x256xf32>
    %59 = arith.addf %45, %58 : vector<8x256xf32>
    %60 = vector.extract_strided_slice %51 {offsets = [0, 0], sizes = [7, 256], strides = [1, 1]} : vector<8x256xf32> to vector<7x256xf32>
    %61 = tpu.concatenate %0, %60 in 0 : vector<1x256xf32>, vector<7x256xf32> -> vector<8x256xf32>
    %62 = arith.addf %61, %55 : vector<8x256xf32>
    %63 = vector.extract_strided_slice %59 {offsets = [1, 0], sizes = [7, 256], strides = [1, 1]} : vector<8x256xf32> to vector<7x256xf32>
    %64 = tpu.concatenate %63, %0 in 0 : vector<7x256xf32>, vector<1x256xf32> -> vector<8x256xf32>
    %65 = arith.addf %62, %64 : vector<8x256xf32>
    %c0_13 = arith.constant 0 : index
    %66 = memref.load %arg5[%c0_13] : memref<1xf32, #tpu.memory_space<smem>>
    %67 = vector.broadcast %66 : f32 to vector<8x256xf32>
    %68 = arith.addf %65, %67 : vector<8x256xf32>
    %cst_14 = arith.constant dense<0xFF800000> : vector<256xf32>
    %69 = vector.multi_reduction <maximumf>, %68, %cst_14 [0] : vector<8x256xf32> to vector<256xf32>
    %70 = vector.shape_cast %69 : vector<256xf32> to vector<1x256xf32>
    %71 = vector.broadcast %70 : vector<1x256xf32> to vector<8x256xf32>
    %72 = arith.subf %68, %71 : vector<8x256xf32>
    %73 = math.exp %72 : vector<8x256xf32>
    %cst_15 = arith.constant dense<0.000000e+00> : vector<256xf32>
    %74 = vector.multi_reduction <add>, %73, %cst_15 [0] : vector<8x256xf32> to vector<256xf32>
    %75 = vector.shape_cast %74 : vector<256xf32> to vector<1x256xf32>
    %76 = tpu.reciprocal %75 {approx = true} : vector<1x256xf32> -> vector<1x256xf32>
    %77 = vector.broadcast %76 : vector<1x256xf32> to vector<8x256xf32>
    %78 = arith.mulf %73, %77 : vector<8x256xf32>
    %79 = vector.extract_strided_slice %78 {offsets = [1, 0], sizes = [7, 256], strides = [1, 1]} : vector<8x256xf32> to vector<7x256xf32>
    %80 = tpu.concatenate %79, %0 in 0 : vector<7x256xf32>, vector<1x256xf32> -> vector<8x256xf32>
    %81 = vector.extract_strided_slice %78 {offsets = [0, 0], sizes = [7, 256], strides = [1, 1]} : vector<8x256xf32> to vector<7x256xf32>
    %82 = tpu.concatenate %0, %81 in 0 : vector<1x256xf32>, vector<7x256xf32> -> vector<8x256xf32>
    %cst_16 = arith.constant 0.000000e+00 : f32
    %83 = vector.broadcast %cst_16 : f32 to vector<1x256xf32>
    %cst_17 = arith.constant 0.000000e+00 : f32
    %84 = vector.broadcast %cst_17 : f32 to vector<1x256xf32>
    %cst_18 = arith.constant 0.000000e+00 : f32
    %85 = vector.broadcast %cst_18 : f32 to vector<1x256xf32>
    %cst_19 = arith.constant 0.000000e+00 : f32
    %86 = vector.broadcast %cst_19 : f32 to vector<1x256xf32>
    %87 = arith.mulf %80, %5 : vector<8x256xf32>
    %cst_20 = arith.constant dense<0.000000e+00> : vector<256xf32>
    %88 = vector.multi_reduction <add>, %87, %cst_20 [0] : vector<8x256xf32> to vector<256xf32>
    %89 = vector.shape_cast %88 : vector<256xf32> to vector<1x256xf32>
    %90 = arith.mulf %78, %5 : vector<8x256xf32>
    %cst_21 = arith.constant dense<0.000000e+00> : vector<256xf32>
    %91 = vector.multi_reduction <add>, %90, %cst_21 [0] : vector<8x256xf32> to vector<256xf32>
    %92 = vector.shape_cast %91 : vector<256xf32> to vector<1x256xf32>
    %93 = arith.mulf %82, %5 : vector<8x256xf32>
    %cst_22 = arith.constant dense<0.000000e+00> : vector<256xf32>
    %94 = vector.multi_reduction <add>, %93, %cst_22 [0] : vector<8x256xf32> to vector<256xf32>
    %95 = vector.shape_cast %94 : vector<256xf32> to vector<1x256xf32>
    %c0_23 = arith.constant 0 : index
    %96 = memref.load %arg2[%c0_23] : memref<48xf32, #tpu.memory_space<smem>>
    %97 = vector.broadcast %96 : f32 to vector<1x256xf32>
    %98 = arith.mulf %97, %89 : vector<1x256xf32>
    %99 = arith.addf %83, %98 : vector<1x256xf32>
    %c16_24 = arith.constant 16 : index
    %100 = memref.load %arg2[%c16_24] : memref<48xf32, #tpu.memory_space<smem>>
    %101 = vector.broadcast %100 : f32 to vector<1x256xf32>
    %102 = arith.mulf %101, %92 : vector<1x256xf32>
    %103 = arith.addf %99, %102 : vector<1x256xf32>
    %c32 = arith.constant 32 : index
    %104 = memref.load %arg2[%c32] : memref<48xf32, #tpu.memory_space<smem>>
    %105 = vector.broadcast %104 : f32 to vector<1x256xf32>
    %106 = arith.mulf %105, %95 : vector<1x256xf32>
    %107 = arith.addf %103, %106 : vector<1x256xf32>
    %c1_25 = arith.constant 1 : index
    %108 = memref.load %arg2[%c1_25] : memref<48xf32, #tpu.memory_space<smem>>
    %109 = vector.broadcast %108 : f32 to vector<1x256xf32>
    %110 = arith.mulf %109, %89 : vector<1x256xf32>
    %111 = arith.addf %84, %110 : vector<1x256xf32>
    %c17 = arith.constant 17 : index
    %112 = memref.load %arg2[%c17] : memref<48xf32, #tpu.memory_space<smem>>
    %113 = vector.broadcast %112 : f32 to vector<1x256xf32>
    %114 = arith.mulf %113, %92 : vector<1x256xf32>
    %115 = arith.addf %111, %114 : vector<1x256xf32>
    %c33 = arith.constant 33 : index
    %116 = memref.load %arg2[%c33] : memref<48xf32, #tpu.memory_space<smem>>
    %117 = vector.broadcast %116 : f32 to vector<1x256xf32>
    %118 = arith.mulf %117, %95 : vector<1x256xf32>
    %119 = arith.addf %115, %118 : vector<1x256xf32>
    %c2_26 = arith.constant 2 : index
    %120 = memref.load %arg2[%c2_26] : memref<48xf32, #tpu.memory_space<smem>>
    %121 = vector.broadcast %120 : f32 to vector<1x256xf32>
    %122 = arith.mulf %121, %89 : vector<1x256xf32>
    %123 = arith.addf %85, %122 : vector<1x256xf32>
    %c18 = arith.constant 18 : index
    %124 = memref.load %arg2[%c18] : memref<48xf32, #tpu.memory_space<smem>>
    %125 = vector.broadcast %124 : f32 to vector<1x256xf32>
    %126 = arith.mulf %125, %92 : vector<1x256xf32>
    %127 = arith.addf %123, %126 : vector<1x256xf32>
    %c34 = arith.constant 34 : index
    %128 = memref.load %arg2[%c34] : memref<48xf32, #tpu.memory_space<smem>>
    %129 = vector.broadcast %128 : f32 to vector<1x256xf32>
    %130 = arith.mulf %129, %95 : vector<1x256xf32>
    %131 = arith.addf %127, %130 : vector<1x256xf32>
    %c3_27 = arith.constant 3 : index
    %132 = memref.load %arg2[%c3_27] : memref<48xf32, #tpu.memory_space<smem>>
    %133 = vector.broadcast %132 : f32 to vector<1x256xf32>
    %134 = arith.mulf %133, %89 : vector<1x256xf32>
    %135 = arith.addf %86, %134 : vector<1x256xf32>
    %c19 = arith.constant 19 : index
    %136 = memref.load %arg2[%c19] : memref<48xf32, #tpu.memory_space<smem>>
    %137 = vector.broadcast %136 : f32 to vector<1x256xf32>
    %138 = arith.mulf %137, %92 : vector<1x256xf32>
    %139 = arith.addf %135, %138 : vector<1x256xf32>
    %c35 = arith.constant 35 : index
    %140 = memref.load %arg2[%c35] : memref<48xf32, #tpu.memory_space<smem>>
    %141 = vector.broadcast %140 : f32 to vector<1x256xf32>
    %142 = arith.mulf %141, %95 : vector<1x256xf32>
    %143 = arith.addf %139, %142 : vector<1x256xf32>
    %144 = arith.mulf %80, %19 : vector<8x256xf32>
    %cst_28 = arith.constant dense<0.000000e+00> : vector<256xf32>
    %145 = vector.multi_reduction <add>, %144, %cst_28 [0] : vector<8x256xf32> to vector<256xf32>
    %146 = vector.shape_cast %145 : vector<256xf32> to vector<1x256xf32>
    %147 = arith.mulf %78, %19 : vector<8x256xf32>
    %cst_29 = arith.constant dense<0.000000e+00> : vector<256xf32>
    %148 = vector.multi_reduction <add>, %147, %cst_29 [0] : vector<8x256xf32> to vector<256xf32>
    %149 = vector.shape_cast %148 : vector<256xf32> to vector<1x256xf32>
    %150 = arith.mulf %82, %19 : vector<8x256xf32>
    %cst_30 = arith.constant dense<0.000000e+00> : vector<256xf32>
    %151 = vector.multi_reduction <add>, %150, %cst_30 [0] : vector<8x256xf32> to vector<256xf32>
    %152 = vector.shape_cast %151 : vector<256xf32> to vector<1x256xf32>
    %c4_31 = arith.constant 4 : index
    %153 = memref.load %arg2[%c4_31] : memref<48xf32, #tpu.memory_space<smem>>
    %154 = vector.broadcast %153 : f32 to vector<1x256xf32>
    %155 = arith.mulf %154, %146 : vector<1x256xf32>
    %156 = arith.addf %107, %155 : vector<1x256xf32>
    %c20 = arith.constant 20 : index
    %157 = memref.load %arg2[%c20] : memref<48xf32, #tpu.memory_space<smem>>
    %158 = vector.broadcast %157 : f32 to vector<1x256xf32>
    %159 = arith.mulf %158, %149 : vector<1x256xf32>
    %160 = arith.addf %156, %159 : vector<1x256xf32>
    %c36 = arith.constant 36 : index
    %161 = memref.load %arg2[%c36] : memref<48xf32, #tpu.memory_space<smem>>
    %162 = vector.broadcast %161 : f32 to vector<1x256xf32>
    %163 = arith.mulf %162, %152 : vector<1x256xf32>
    %164 = arith.addf %160, %163 : vector<1x256xf32>
    %c5_32 = arith.constant 5 : index
    %165 = memref.load %arg2[%c5_32] : memref<48xf32, #tpu.memory_space<smem>>
    %166 = vector.broadcast %165 : f32 to vector<1x256xf32>
    %167 = arith.mulf %166, %146 : vector<1x256xf32>
    %168 = arith.addf %119, %167 : vector<1x256xf32>
    %c21 = arith.constant 21 : index
    %169 = memref.load %arg2[%c21] : memref<48xf32, #tpu.memory_space<smem>>
    %170 = vector.broadcast %169 : f32 to vector<1x256xf32>
    %171 = arith.mulf %170, %149 : vector<1x256xf32>
    %172 = arith.addf %168, %171 : vector<1x256xf32>
    %c37 = arith.constant 37 : index
    %173 = memref.load %arg2[%c37] : memref<48xf32, #tpu.memory_space<smem>>
    %174 = vector.broadcast %173 : f32 to vector<1x256xf32>
    %175 = arith.mulf %174, %152 : vector<1x256xf32>
    %176 = arith.addf %172, %175 : vector<1x256xf32>
    %c6_33 = arith.constant 6 : index
    %177 = memref.load %arg2[%c6_33] : memref<48xf32, #tpu.memory_space<smem>>
    %178 = vector.broadcast %177 : f32 to vector<1x256xf32>
    %179 = arith.mulf %178, %146 : vector<1x256xf32>
    %180 = arith.addf %131, %179 : vector<1x256xf32>
    %c22 = arith.constant 22 : index
    %181 = memref.load %arg2[%c22] : memref<48xf32, #tpu.memory_space<smem>>
    %182 = vector.broadcast %181 : f32 to vector<1x256xf32>
    %183 = arith.mulf %182, %149 : vector<1x256xf32>
    %184 = arith.addf %180, %183 : vector<1x256xf32>
    %c38 = arith.constant 38 : index
    %185 = memref.load %arg2[%c38] : memref<48xf32, #tpu.memory_space<smem>>
    %186 = vector.broadcast %185 : f32 to vector<1x256xf32>
    %187 = arith.mulf %186, %152 : vector<1x256xf32>
    %188 = arith.addf %184, %187 : vector<1x256xf32>
    %c7_34 = arith.constant 7 : index
    %189 = memref.load %arg2[%c7_34] : memref<48xf32, #tpu.memory_space<smem>>
    %190 = vector.broadcast %189 : f32 to vector<1x256xf32>
    %191 = arith.mulf %190, %146 : vector<1x256xf32>
    %192 = arith.addf %143, %191 : vector<1x256xf32>
    %c23 = arith.constant 23 : index
    %193 = memref.load %arg2[%c23] : memref<48xf32, #tpu.memory_space<smem>>
    %194 = vector.broadcast %193 : f32 to vector<1x256xf32>
    %195 = arith.mulf %194, %149 : vector<1x256xf32>
    %196 = arith.addf %192, %195 : vector<1x256xf32>
    %c39 = arith.constant 39 : index
    %197 = memref.load %arg2[%c39] : memref<48xf32, #tpu.memory_space<smem>>
    %198 = vector.broadcast %197 : f32 to vector<1x256xf32>
    %199 = arith.mulf %198, %152 : vector<1x256xf32>
    %200 = arith.addf %196, %199 : vector<1x256xf32>
    %201 = arith.mulf %80, %33 : vector<8x256xf32>
    %cst_35 = arith.constant dense<0.000000e+00> : vector<256xf32>
    %202 = vector.multi_reduction <add>, %201, %cst_35 [0] : vector<8x256xf32> to vector<256xf32>
    %203 = vector.shape_cast %202 : vector<256xf32> to vector<1x256xf32>
    %204 = arith.mulf %78, %33 : vector<8x256xf32>
    %cst_36 = arith.constant dense<0.000000e+00> : vector<256xf32>
    %205 = vector.multi_reduction <add>, %204, %cst_36 [0] : vector<8x256xf32> to vector<256xf32>
    %206 = vector.shape_cast %205 : vector<256xf32> to vector<1x256xf32>
    %207 = arith.mulf %82, %33 : vector<8x256xf32>
    %cst_37 = arith.constant dense<0.000000e+00> : vector<256xf32>
    %208 = vector.multi_reduction <add>, %207, %cst_37 [0] : vector<8x256xf32> to vector<256xf32>
    %209 = vector.shape_cast %208 : vector<256xf32> to vector<1x256xf32>
    %c8_38 = arith.constant 8 : index
    %210 = memref.load %arg2[%c8_38] : memref<48xf32, #tpu.memory_space<smem>>
    %211 = vector.broadcast %210 : f32 to vector<1x256xf32>
    %212 = arith.mulf %211, %203 : vector<1x256xf32>
    %213 = arith.addf %164, %212 : vector<1x256xf32>
    %c24_39 = arith.constant 24 : index
    %214 = memref.load %arg2[%c24_39] : memref<48xf32, #tpu.memory_space<smem>>
    %215 = vector.broadcast %214 : f32 to vector<1x256xf32>
    %216 = arith.mulf %215, %206 : vector<1x256xf32>
    %217 = arith.addf %213, %216 : vector<1x256xf32>
    %c40 = arith.constant 40 : index
    %218 = memref.load %arg2[%c40] : memref<48xf32, #tpu.memory_space<smem>>
    %219 = vector.broadcast %218 : f32 to vector<1x256xf32>
    %220 = arith.mulf %219, %209 : vector<1x256xf32>
    %221 = arith.addf %217, %220 : vector<1x256xf32>
    %c9_40 = arith.constant 9 : index
    %222 = memref.load %arg2[%c9_40] : memref<48xf32, #tpu.memory_space<smem>>
    %223 = vector.broadcast %222 : f32 to vector<1x256xf32>
    %224 = arith.mulf %223, %203 : vector<1x256xf32>
    %225 = arith.addf %176, %224 : vector<1x256xf32>
    %c25 = arith.constant 25 : index
    %226 = memref.load %arg2[%c25] : memref<48xf32, #tpu.memory_space<smem>>
    %227 = vector.broadcast %226 : f32 to vector<1x256xf32>
    %228 = arith.mulf %227, %206 : vector<1x256xf32>
    %229 = arith.addf %225, %228 : vector<1x256xf32>
    %c41 = arith.constant 41 : index
    %230 = memref.load %arg2[%c41] : memref<48xf32, #tpu.memory_space<smem>>
    %231 = vector.broadcast %230 : f32 to vector<1x256xf32>
    %232 = arith.mulf %231, %209 : vector<1x256xf32>
    %233 = arith.addf %229, %232 : vector<1x256xf32>
    %c10_41 = arith.constant 10 : index
    %234 = memref.load %arg2[%c10_41] : memref<48xf32, #tpu.memory_space<smem>>
    %235 = vector.broadcast %234 : f32 to vector<1x256xf32>
    %236 = arith.mulf %235, %203 : vector<1x256xf32>
    %237 = arith.addf %188, %236 : vector<1x256xf32>
    %c26 = arith.constant 26 : index
    %238 = memref.load %arg2[%c26] : memref<48xf32, #tpu.memory_space<smem>>
    %239 = vector.broadcast %238 : f32 to vector<1x256xf32>
    %240 = arith.mulf %239, %206 : vector<1x256xf32>
    %241 = arith.addf %237, %240 : vector<1x256xf32>
    %c42 = arith.constant 42 : index
    %242 = memref.load %arg2[%c42] : memref<48xf32, #tpu.memory_space<smem>>
    %243 = vector.broadcast %242 : f32 to vector<1x256xf32>
    %244 = arith.mulf %243, %209 : vector<1x256xf32>
    %245 = arith.addf %241, %244 : vector<1x256xf32>
    %c11_42 = arith.constant 11 : index
    %246 = memref.load %arg2[%c11_42] : memref<48xf32, #tpu.memory_space<smem>>
    %247 = vector.broadcast %246 : f32 to vector<1x256xf32>
    %248 = arith.mulf %247, %203 : vector<1x256xf32>
    %249 = arith.addf %200, %248 : vector<1x256xf32>
    %c27 = arith.constant 27 : index
    %250 = memref.load %arg2[%c27] : memref<48xf32, #tpu.memory_space<smem>>
    %251 = vector.broadcast %250 : f32 to vector<1x256xf32>
    %252 = arith.mulf %251, %206 : vector<1x256xf32>
    %253 = arith.addf %249, %252 : vector<1x256xf32>
    %c43 = arith.constant 43 : index
    %254 = memref.load %arg2[%c43] : memref<48xf32, #tpu.memory_space<smem>>
    %255 = vector.broadcast %254 : f32 to vector<1x256xf32>
    %256 = arith.mulf %255, %209 : vector<1x256xf32>
    %257 = arith.addf %253, %256 : vector<1x256xf32>
    %258 = arith.mulf %80, %47 : vector<8x256xf32>
    %cst_43 = arith.constant dense<0.000000e+00> : vector<256xf32>
    %259 = vector.multi_reduction <add>, %258, %cst_43 [0] : vector<8x256xf32> to vector<256xf32>
    %260 = vector.shape_cast %259 : vector<256xf32> to vector<1x256xf32>
    %261 = arith.mulf %78, %47 : vector<8x256xf32>
    %cst_44 = arith.constant dense<0.000000e+00> : vector<256xf32>
    %262 = vector.multi_reduction <add>, %261, %cst_44 [0] : vector<8x256xf32> to vector<256xf32>
    %263 = vector.shape_cast %262 : vector<256xf32> to vector<1x256xf32>
    %264 = arith.mulf %82, %47 : vector<8x256xf32>
    %cst_45 = arith.constant dense<0.000000e+00> : vector<256xf32>
    %265 = vector.multi_reduction <add>, %264, %cst_45 [0] : vector<8x256xf32> to vector<256xf32>
    %266 = vector.shape_cast %265 : vector<256xf32> to vector<1x256xf32>
    %c12 = arith.constant 12 : index
    %267 = memref.load %arg2[%c12] : memref<48xf32, #tpu.memory_space<smem>>
    %268 = vector.broadcast %267 : f32 to vector<1x256xf32>
    %269 = arith.mulf %268, %260 : vector<1x256xf32>
    %270 = arith.addf %221, %269 : vector<1x256xf32>
    %c28 = arith.constant 28 : index
    %271 = memref.load %arg2[%c28] : memref<48xf32, #tpu.memory_space<smem>>
    %272 = vector.broadcast %271 : f32 to vector<1x256xf32>
    %273 = arith.mulf %272, %263 : vector<1x256xf32>
    %274 = arith.addf %270, %273 : vector<1x256xf32>
    %c44 = arith.constant 44 : index
    %275 = memref.load %arg2[%c44] : memref<48xf32, #tpu.memory_space<smem>>
    %276 = vector.broadcast %275 : f32 to vector<1x256xf32>
    %277 = arith.mulf %276, %266 : vector<1x256xf32>
    %278 = arith.addf %274, %277 : vector<1x256xf32>
    %c13 = arith.constant 13 : index
    %279 = memref.load %arg2[%c13] : memref<48xf32, #tpu.memory_space<smem>>
    %280 = vector.broadcast %279 : f32 to vector<1x256xf32>
    %281 = arith.mulf %280, %260 : vector<1x256xf32>
    %282 = arith.addf %233, %281 : vector<1x256xf32>
    %c29 = arith.constant 29 : index
    %283 = memref.load %arg2[%c29] : memref<48xf32, #tpu.memory_space<smem>>
    %284 = vector.broadcast %283 : f32 to vector<1x256xf32>
    %285 = arith.mulf %284, %263 : vector<1x256xf32>
    %286 = arith.addf %282, %285 : vector<1x256xf32>
    %c45 = arith.constant 45 : index
    %287 = memref.load %arg2[%c45] : memref<48xf32, #tpu.memory_space<smem>>
    %288 = vector.broadcast %287 : f32 to vector<1x256xf32>
    %289 = arith.mulf %288, %266 : vector<1x256xf32>
    %290 = arith.addf %286, %289 : vector<1x256xf32>
    %c14 = arith.constant 14 : index
    %291 = memref.load %arg2[%c14] : memref<48xf32, #tpu.memory_space<smem>>
    %292 = vector.broadcast %291 : f32 to vector<1x256xf32>
    %293 = arith.mulf %292, %260 : vector<1x256xf32>
    %294 = arith.addf %245, %293 : vector<1x256xf32>
    %c30 = arith.constant 30 : index
    %295 = memref.load %arg2[%c30] : memref<48xf32, #tpu.memory_space<smem>>
    %296 = vector.broadcast %295 : f32 to vector<1x256xf32>
    %297 = arith.mulf %296, %263 : vector<1x256xf32>
    %298 = arith.addf %294, %297 : vector<1x256xf32>
    %c46 = arith.constant 46 : index
    %299 = memref.load %arg2[%c46] : memref<48xf32, #tpu.memory_space<smem>>
    %300 = vector.broadcast %299 : f32 to vector<1x256xf32>
    %301 = arith.mulf %300, %266 : vector<1x256xf32>
    %302 = arith.addf %298, %301 : vector<1x256xf32>
    %c15 = arith.constant 15 : index
    %303 = memref.load %arg2[%c15] : memref<48xf32, #tpu.memory_space<smem>>
    %304 = vector.broadcast %303 : f32 to vector<1x256xf32>
    %305 = arith.mulf %304, %260 : vector<1x256xf32>
    %306 = arith.addf %257, %305 : vector<1x256xf32>
    %c31 = arith.constant 31 : index
    %307 = memref.load %arg2[%c31] : memref<48xf32, #tpu.memory_space<smem>>
    %308 = vector.broadcast %307 : f32 to vector<1x256xf32>
    %309 = arith.mulf %308, %263 : vector<1x256xf32>
    %310 = arith.addf %306, %309 : vector<1x256xf32>
    %c47 = arith.constant 47 : index
    %311 = memref.load %arg2[%c47] : memref<48xf32, #tpu.memory_space<smem>>
    %312 = vector.broadcast %311 : f32 to vector<1x256xf32>
    %313 = arith.mulf %312, %266 : vector<1x256xf32>
    %314 = arith.addf %310, %313 : vector<1x256xf32>
    %c0_46 = arith.constant 0 : index
    %315 = memref.load %arg3[%c0_46] : memref<4xf32, #tpu.memory_space<smem>>
    %316 = vector.broadcast %315 : f32 to vector<1x256xf32>
    %317 = arith.addf %278, %316 : vector<1x256xf32>
    %c0_47 = arith.constant 0 : index
    %c0_48 = arith.constant 0 : index
    %c0_49 = arith.constant 0 : index
    %318 = vector.load %arg7[%c0_47, %c0_48, %c0_49] : memref<1x4x256xf32, #tpu.memory_space<vmem>>, vector<1x1x256xf32>
    %319 = vector.shape_cast %318 : vector<1x1x256xf32> to vector<1x256xf32>
    %320 = vector.shape_cast %317 : vector<1x256xf32> to vector<1x1x256xf32>
    tpu.vector_store %arg7[%c0_47, %c0_48, %c0_49], %320 {strides = array<i32>} : memref<1x4x256xf32, #tpu.memory_space<vmem>>, vector<1x1x256xf32>,
    %c1_50 = arith.constant 1 : index
    %321 = memref.load %arg3[%c1_50] : memref<4xf32, #tpu.memory_space<smem>>
    %322 = vector.broadcast %321 : f32 to vector<1x256xf32>
    %323 = arith.addf %290, %322 : vector<1x256xf32>
    %c0_51 = arith.constant 0 : index
    %c1_52 = arith.constant 1 : index
    %c0_53 = arith.constant 0 : index
    %324 = vector.load %arg7[%c0_51, %c1_52, %c0_53] : memref<1x4x256xf32, #tpu.memory_space<vmem>>, vector<1x1x256xf32>
    %325 = vector.shape_cast %324 : vector<1x1x256xf32> to vector<1x256xf32>
    %326 = vector.shape_cast %323 : vector<1x256xf32> to vector<1x1x256xf32>
    tpu.vector_store %arg7[%c0_51, %c1_52, %c0_53], %326 {strides = array<i32>} : memref<1x4x256xf32, #tpu.memory_space<vmem>>, vector<1x1x256xf32>,
    %c2_54 = arith.constant 2 : index
    %327 = memref.load %arg3[%c2_54] : memref<4xf32, #tpu.memory_space<smem>>
    %328 = vector.broadcast %327 : f32 to vector<1x256xf32>
    %329 = arith.addf %302, %328 : vector<1x256xf32>
    %c0_55 = arith.constant 0 : index
    %c2_56 = arith.constant 2 : index
    %c0_57 = arith.constant 0 : index
    %330 = vector.load %arg7[%c0_55, %c2_56, %c0_57] : memref<1x4x256xf32, #tpu.memory_space<vmem>>, vector<1x1x256xf32>
    %331 = vector.shape_cast %330 : vector<1x1x256xf32> to vector<1x256xf32>
    %332 = vector.shape_cast %329 : vector<1x256xf32> to vector<1x1x256xf32>
    tpu.vector_store %arg7[%c0_55, %c2_56, %c0_57], %332 {strides = array<i32>} : memref<1x4x256xf32, #tpu.memory_space<vmem>>, vector<1x1x256xf32>,
    %c3_58 = arith.constant 3 : index
    %333 = memref.load %arg3[%c3_58] : memref<4xf32, #tpu.memory_space<smem>>
    %334 = vector.broadcast %333 : f32 to vector<1x256xf32>
    %335 = arith.addf %314, %334 : vector<1x256xf32>
    %c0_59 = arith.constant 0 : index
    %c3_60 = arith.constant 3 : index
    %c0_61 = arith.constant 0 : index
    %336 = vector.load %arg7[%c0_59, %c3_60, %c0_61] : memref<1x4x256xf32, #tpu.memory_space<vmem>>, vector<1x1x256xf32>
    %337 = vector.shape_cast %336 : vector<1x1x256xf32> to vector<1x256xf32>
    %338 = vector.shape_cast %335 : vector<1x256xf32> to vector<1x1x256xf32>
    tpu.vector_store %arg7[%c0_59, %c3_60, %c0_61], %338 {strides = array<i32>} : memref<1x4x256xf32, #tpu.memory_space<vmem>>, vector<1x1x256xf32>,
    return
  }
  func.func @transform_0(%arg0: i32, %arg1: i32) -> i32 {
    %c0_i32 = arith.constant 0 : i32
    %c0_i32_0 = arith.constant 0 : i32
    return %c0_i32 : i32
  }
  func.func @transform_1(%arg0: i32, %arg1: i32) -> i32 {
    %c0_i32 = arith.constant 0 : i32
    %c0_i32_0 = arith.constant 0 : i32
    return %c0_i32 : i32
  }
  func.func @transform_2(%arg0: i32, %arg1: i32) -> i32 {
    %c0_i32 = arith.constant 0 : i32
    %c0_i32_0 = arith.constant 0 : i32
    return %c0_i32 : i32
  }
  func.func @transform_3(%arg0: i32, %arg1: i32) -> i32 {
    %c0_i32 = arith.constant 0 : i32
    %c0_i32_0 = arith.constant 0 : i32
    return %c0_i32 : i32
  }
  func.func @transform_4(%arg0: i32, %arg1: i32) -> (i32, i32, i32) {
    %c0_i32 = arith.constant 0 : i32
    %c0_i32_0 = arith.constant 0 : i32
    return %arg0, %c0_i32, %arg1 : i32, i32, i32
  }
  func.func @transform_5(%arg0: i32, %arg1: i32) -> (i32, i32, i32) {
    %c0_i32 = arith.constant 0 : i32
    %c0_i32_0 = arith.constant 0 : i32
    return %arg0, %c0_i32, %arg1 : i32, i32, i32
  }
}

</mosaic_0001>

<bundles_post_ra>
// kernel: tpu_custom_call.1
= control target key start
LH: loop header
LB: loop body
LE: loop exit
PB: predicated region body
PF: predicated region fallthrough
CT: control target
= control target key end

     0   :  { %s2294_s0 = inlined_call_operand.vmem [shape: f32[48], index: 0, kind: input, shape index: {}]   ;;  %s2295_s1 = inlined_call_operand.vmem [shape: f32[4], index: 1, kind: input, shape index: {}]   ;;  %s2296_s2 = inlined_call_operand.vmem [shape: f32[12], index: 2, kind: input, shape index: {}]   ;;  %s2297_s3 = inlined_call_operand.<no memory space> [shape: f32[1], index: 3, kind: input, shape index: {}]   ;;  %s2298_s4 = inlined_call_operand.hbm [shape: f32[2,32,256], index: 4, kind: input, shape index: {}]   ;;  %s2299_s5 = inlined_call_operand.hbm [shape: f32[2,4,256], index: 5, kind: output, shape index: {}]  }
   0x1   :  { %2382 = sst [smem:[#allocation61_spill]] %s2294_s0 }
   0x2   :  { %2383 = sst [smem:[#allocation62_spill]] %s2295_s1 }
   0x3   :  { %2384 = sst [smem:[#allocation63_spill]] %s2296_s2 }
   0x4   :  { %2385 = sst [smem:[#allocation64_spill]] %s2298_s4 }
   0x5   :  { %2386 = sst [smem:[#allocation65_spill]] %s2299_s5 }
   0x6   :  { %10 = sst [smem:[#allocation2]] %s2297_s3 }
   0x7   :  { %11 = vsyncpa [#allocation6], 0 }
   0x8   :  { %12 = vsyncpa [#allocation8], 0 }
   0x9   :  { %13 = vsyncpa [#allocation4], 0 }
   0xa   :  { %15 = vsyncpa [#allocation4 + $0x1], 0 }
   0xb   :  { %16 = vsyncpa [#allocation5], 0 }
   0xc   :  { %18 = vsyncpa [#allocation5 + $0x1], 0  ;;  %s1539_s20 = smov 0   ;;  %s1541_s21 = smov 0  }
   0xd   :  { %s1543_s22 = smov 0   ;;  %s1545_s23 = smov 0  }
   0xe   :  { %s1547_s24 = smov 0   ;;  %s1549_s25 = smov 0  }
   0xf LB: > { %2387 = sst [smem:[#allocation16_spill]] %s1476_s20  ;;  %s1144_s3 = sadd.s32 4294967295, %s1496_s25   ;;  %s1496_s25 = sphi %s1549_s25, %s24_s25   ;;  %s1492_s24 = sphi %s1547_s24, %s2566_s24   ;;  %s1488_s23 = sphi %s1545_s23, %s2565_s23   ;;  %s1484_s22 = sphi %s1543_s22, %s2564_s22   ;;  %s1480_s21 = sphi %s1541_s21, %s2563_s21   ;;  %s1476_s20 = sphi %s1539_s20, %s2562_s20  }
  0x10   : > { %2388 = sst [smem:[#allocation17_spill]] %s1480_s21  ;;  %s1145_s26 = sadd.s32 4294967294, %s1496_s25  }
  0x11   : > { %2389 = sst [smem:[#allocation18_spill]] %s1484_s22  ;;  %p142_p0 = scmp.ne.s32.totalorder %s1480_s21, %s1476_s20 }
  0x12   : > { %2390 = sst [smem:[#allocation19_spill]] %s1488_s23  ;;  %p1573_p1 = scmp.eq.s32.totalorder %s1144_s3, 0 }
  0x13   : > { %2391 = sst [smem:[#allocation20_spill]] %s1492_s24  ;;  %p1577_p2 = scmp.eq.s32.totalorder %s1144_s3, 1 }
  0x14   : > { %2392 = sst [smem:[#allocation21_spill]] %s1496_s25  ;;  %p174_p3 = scmp.eq.s32.totalorder %s1145_s26, 1 }
  0x15   : > { %s2393_s27 = scalar_select %p1573_p1, 1, 0 }
  0x16   : > { %s2394_s28 = scalar_select %p1577_p2, 1, 0 }
  0x17   : > { %p1583_p4 = por %p1573_p1, %p142_p0  ;;  %p1146_p5 = scmp.ge.s32.totalorder %s1496_s25, 1 }
  0x18   : > { %p1588_p6 = por %p174_p3, %p142_p0  ;;  %p181_p7 = scmp.lt.s32.totalorder %s1496_s25, 3 }
  0x19   : > { %s2395_s29 = scalar_select %p1583_p4, 1, 0 }
  0x1a   : > { %s2396_s30 = scalar_select %p1588_p6, 1, 0 }
  0x1b   : > { %s2398_s1 = sld [smem:[#allocation62_spill]]  ;;  %p1596_p8 = pnand %p1146_p5, %p181_p7 }
  0x1c   : > { %2397 = sst [smem:[#allocation22_spill]] %s2396_s30 }
  0x1d   : > { %s2399_s9 = scalar_select %p1596_p8, 1, 0 }
  0x1e   : > { %p1247_p10 = pneg %p1596_p8  ;;  %s2400_s0 = sld [smem:[#allocation61_spill]] }
  0x1f   : > { %s2402_s2 = sld [smem:[#allocation63_spill]] }
  0x20   : > { %p1608_p11 = pnand %p1247_p10, %p1573_p1 }
  0x21   : > { %s205_s8 = sshll.u32 %s2398_s1, 4  ;;  %s206_s8 = int_to_ptr.vmem [resolvable:$true] %s205_s8 }
  0x22   : > { %s1335_s17 = scalar_lea.vmem %s206_s8, 16  ;;  %p1337_p13 = pneg %p1608_p11 }
  0x23   : > { %p1336_p12 = scmp.ne.s32.totalorder %s206_s8, %s1335_s17  ;;  %p1343_p5 = scmp.lt.s32.totalorder %s206_s8, %s206_s8 }
  0x24   : > { %s194_s12 = sshll.u32 %s2400_s0, 4  ;;  %p1344_p7 = scmp.lt.s32.totalorder %s1335_s17, %s1335_s17  ;;  %s195_s12 = int_to_ptr.vmem [resolvable:$true] %s194_s12 }
  0x25   : > { %s216_s16 = sshll.u32 %s2402_s2, 4  ;;  %p1338_p0 = pnand %p1337_p13, %p1336_p12  ;;  %s1615_s16 = int_to_ptr.vmem [resolvable:$true] %s216_s16 }
  0x26   : > { %p1345_p10 = por %p1344_p7, %p1343_p5 }
  0x27   : > { %p1339_p3 = pneg %p1338_p0 }
  0x29   : > { %p1346_p9 = pnand %p1345_p10, %p1339_p3 }
  0x2b   : > { %1349 = shalt.err (!%p1346_p9)
}
  0x2c   : > { %s1498_s18 = smov [#allocation7]   ;;  %s1350_s19 = scalar_lea.vmem %s195_s12, 16 }
  0x2d   : > { %1253 = dma.vmem_to_smem (!%p1608_p11), %s206_s8, 16, %s1498_s18, [#allocation8]  }
  0x2e   : > { %p1351_p6 = scmp.ne.s32.totalorder %s195_s12, %s1350_s19  ;;  %p1358_p8 = scmp.lt.s32.totalorder %s195_s12, %s195_s12 }
  0x2f   : > { %p1359_p2 = scmp.lt.s32.totalorder %s1350_s19, %s1350_s19 }
  0x30   : > { %p1353_p4 = pnand %p1351_p6, %p1337_p13 }
  0x31   : > { %p1360_p12 = por %p1359_p2, %p1358_p8 }
  0x32   : > { %p1354_p1 = pneg %p1353_p4 }
  0x34   : > { %p1361_p0 = pnand %p1360_p12, %p1354_p1 }
  0x36   : > { %1364 = shalt.err (!%p1361_p0)
}
  0x37   : > { %s1499_s3 = smov [#allocation3]   ;;  %s1365_s26 = scalar_lea.vmem %s1615_s16, 16 }
  0x38   : > { %1250 = dma.vmem_to_smem (!%p1608_p11), %s195_s12, 16, %s1499_s3, [#allocation6]  }
  0x39   : > { %p1366_p9 = scmp.ne.s32.totalorder %s1615_s16, %s1365_s26  ;;  %p1373_p4 = scmp.lt.s32.totalorder %s1615_s16, %s1615_s16 }
  0x3a   : > { %p1374_p5 = scmp.lt.s32.totalorder %s1365_s26, %s1365_s26 }
  0x3b   : > { %p1368_p3 = pnand %p1366_p9, %p1337_p13 }
  0x3c   : > { %p1375_p2 = por %p1374_p5, %p1373_p4 }
  0x3d   : > { %p1369_p6 = pneg %p1368_p3 }
  0x3f   : > { %p1376_p1 = pnand %p1375_p2, %p1369_p6 }
  0x41   : > { %1379 = shalt.err (!%p1376_p1)
}
  0x42   : > { %s1500_s6 = smov [#allocation9]   ;;  %s129_s7 = sadd.s32 1, %s1484_s22 }
  0x43   : > { %1256 = dma.vmem_to_smem (!%p1608_p11), %s1615_s16, 16, %s1500_s6, [#allocation8]  }
  0x44   : > { %s36_s8 = sadd.s32 1, %s1492_s24  ;;  %p136_p8 = scmp.ne.s32.totalorder %s1484_s22, %s1480_s21 }
  0x45   : > { %p38_p13 = scmp.ge.s32.totalorder %s36_s8, 2  ;;  %p137_p7 = scmp.eq.s32.totalorder %s1496_s25, 0 }
  0x46   : > { %p2403_p10 = scmp.ne.s32.totalorder %s2394_s28, 0  ;;  %p1268_p0 = scmp.lt.s32.totalorder %s1496_s25, 2 }
  0x47   : > { %s2568_s8 = smov (%p38_p13, %s36_s8), 0  ;;  %p138_p9 = por %p137_p7, %p136_p8 }
  0x48   : > { %p1646_p12 = por %p2403_p10, %p136_p8  ;;  %2406 = sst [smem:[#allocation24_spill]] %s2568_s8 }
  0x49   : > { %s230_s11 = sand.u32 1, %s1484_s22   ;;  %s124_s12 = ssub.s32 %s1492_s24, %s2568_s8 }
  0x4a   : > { %s2404_s10 = scalar_select %p1646_p12, 1, 0 }
  0x4b   : > { %p127_p3 = scmp.eq.s32.totalorder %s124_s12, 0  ;;  %s1151_s13 = sshll.u32 %s230_s11, 6 }
  0x4c   : > { %2405 = sst [smem:[#allocation23_spill]] %s2404_s10  ;;  %s1229_s14 = sshll.u32 %s1492_s24, 10 }
  0x4d   : > { %s1658_s15 = scalar_select %p127_p3, %s1484_s22, %s129_s7  }
  0x4e   : > { %s2408_s4 = sld [smem:[#allocation64_spill]]  ;;  %s234_s18 = scalar_lea.vmem [#allocation10], %s1151_s13 }
  0x4f   : > { %2407 = sst [smem:[#allocation25_spill]] %s1658_s15  ;;  %s243_s19 = sshll.u32 %s234_s18, 4  ;;  %s244_s19 = int_to_ptr.vmem [resolvable:$true] %s243_s19 }
  0x50   : > { %p1665_p11 = pnand %p1268_p0, %p138_p9  ;;  %s231_s26 = scalar_lea.sflag [#allocation4], %s230_s11 }
  0x51   : > { %s1393_s6 = scalar_lea.vmem %s244_s19, 1024  ;;  %s1501_s7 = smov [#allocation10]  }
  0x52   : > { %p1382_p6 = pneg %p1665_p11  ;;  %p1394_p4 = scmp.ne.s32.totalorder %s244_s19, %s1393_s6 }
  0x53   : > { %s1398_s12 = sshll.u32 %s1501_s7, 4  ;;  %s1399_s12 = int_to_ptr.vmem [resolvable:$false] %s1398_s12 }
  0x54   : > { %s242_s28 = scalar_lea.hbm %s2408_s4, %s1229_s14  ;;  %p1396_p5 = pnand %p1394_p4, %p1382_p6 }
  0x55   : > { %s1400_s14 = scalar_lea.vmem %s1399_s12, 2048  ;;  %p1401_p1 = scmp.lt.s32.totalorder %s244_s19, %s1399_s12 }
  0x56   : > { %p1397_p2 = pneg %p1396_p5  ;;  %p1402_p8 = scmp.lt.s32.totalorder %s1400_s14, %s1393_s6 }
  0x58   : > { %p1403_p13 = por %p1402_p8, %p1401_p1 }
  0x5a   : > { %p1404_p7 = pnand %p1403_p13, %p1397_p2 }
  0x5c   : > { %1407 = shalt.err (!%p1404_p7)
}
  0x5d   : > { %s1502_s13 = smov 256   ;;  %s1503_s16 = smov 16  }
  0x5e   : > { %1260 = dma.hbm_to_vmem [thread:$0]  (!%p1665_p11), %s242_s28, 1024, %s244_s19, %s231_s26, %s1502_s13, %s1502_s13, %s1503_s16  }
  0x5f   : > { %p2410_p10 = scmp.ne.s32.totalorder %s2399_s9, 0 }
  0x61   : > { %255 = sbr.rel (%p2410_p10) target bundleno = 332 (0x14c), region = 40 }
  0x66   : > { %p2411_p0 = scmp.ne.s32.totalorder %s2393_s27, 0 }
  0x68   : > { %1459 = dma.done.wait (%p2411_p0), [#allocation6], 16  }
  0x69   : > { %1461 = vsyncadd (%p2411_p0), [#allocation6], 4294967280 }
  0x6a   : > { %1463 = dma.done.wait (%p2411_p0), [#allocation8], 32  }
  0x6b   : > { %1465 = vsyncadd (%p2411_p0), [#allocation8], 4294967264  ;;  %s1684_s11 = sand.u32 1, %s1480_s21   ;;  %p2413_p9 = scmp.ne.s32.totalorder %s2395_s29, 0 }
  0x6c   : > { %2412 = sst [smem:[#allocation26_spill]] %s1684_s11  ;;  %s1158_s9 = sshll.u32 %s1684_s11, 6 }
  0x6d   : > { %s270_s17 = scalar_lea.sflag [#allocation4], %s1684_s11  ;;  %s1688_s28 = scalar_lea.vmem [#allocation10], %s1158_s9 }
  0x6e   : > { %1467 = dma.done.wait (%p2413_p9), %s270_s17, 1024  }
  0x6f   : > { %1469 = vsyncadd (%p2413_p9), %s270_s17, 4294966272 }
  0x70   : > { %278 = sfence }
  0x71   : > { %s305_s18 = sld [smem:[#allocation9]]  ;;  %v1695_v0 = vld [vmem:[%s1688_s28] sm:$0xff]  ;;  %v1698_v1 = vld [vmem:[%s1688_s28 + $0x8] sm:$0xff]  ;;  %v1703_v4 = vld [vmem:[%s1688_s28 + $0x10] sm:$0xff]  ;;  %vm389_vm0 = vcmask 1040384   ;;  %vm400_vm1 = vcmask 1046528  }
  0x72   : > { %s1160_s27 = sld [smem:[#allocation9 + $0x4]]  ;;  %v1706_v5 = vld [vmem:[%s1688_s28 + $0x18] sm:$0xff]  ;;  %v1727_v20 = vld [vmem:[%s1688_s28 + $0x20] sm:$0xff]  ;;  %v1730_v21 = vld [vmem:[%s1688_s28 + $0x28] sm:$0xff] }
  0x73   : > { %s1161_s19 = sld [smem:[#allocation9 + $0x8]]  ;;  %v1741_v34 = vld [vmem:[%s1688_s28 + $0x30] sm:$0xff]  ;;  %v1744_v35 = vld [vmem:[%s1688_s28 + $0x38] sm:$0xff] }
  0x74   : > { %s1162_s3 = sld [smem:[#allocation9 + $0x1]] }
  0x75   : > { %s1163_s26 = sld [smem:[#allocation9 + $0x5]] }
  0x76   : > { %s1164_s6 = sld [smem:[#allocation9 + $0x9]] }
  0x77   : > { %v306_v2 = vstv %s305_s18  ;;  %s1700_s7 = sld [smem:[#allocation9 + $0x2]] }
  0x78   : > { %v312_v3 = vstv %s1160_s27  ;;  %s1708_s29 = sld [smem:[#allocation9 + $0x6]]  ;;  %v307_v6 = vmul.f32 %v306_v2, %v1695_v0  ;;  %v308_v7 = vmul.f32 %v306_v2, %v1698_v1 }
  0x79   : > { %v318_v8 = vstv %s1161_s19  ;;  %s1712_s12 = sld [smem:[#allocation9 + $0xa]]  ;;  %v313_v9 = vmul.f32 %v312_v3, %v1695_v0  ;;  %v314_v10 = vmul.f32 %v312_v3, %v1698_v1 }
  0x7a   : > { %v319_v11 = vmul.f32 %v318_v8, %v1695_v0  ;;  %v326_v12 = vstv %s1162_s3  ;;  %s1717_s14 = sld [smem:[#allocation9 + $0x3]]  ;;  %v320_v13 = vmul.f32 %v318_v8, %v1698_v1 }
  0x7b   : > { %v327_v14 = vmul.f32 %v326_v12, %v1703_v4  ;;  %v328_v15 = vmul.f32 %v326_v12, %v1706_v5  ;;  %v332_v16 = vstv %s1163_s26  ;;  %s1722_s13 = sld [smem:[#allocation9 + $0x7]] }
  0x7c   : > { %v333_v17 = vmul.f32 %v332_v16, %v1703_v4  ;;  %v334_v18 = vmul.f32 %v332_v16, %v1706_v5  ;;  %v338_v19 = vstv %s1164_s6  ;;  %s1732_s16 = sld [smem:[#allocation9 + $0xb]] }
  0x7d   : > { %v329_v22 = vadd.f32 %v327_v14, %v307_v6  ;;  %v330_v23 = vadd.f32 %v328_v15, %v308_v7  ;;  %v339_v24 = vmul.f32 %v338_v19, %v1703_v4  ;;  %v340_v25 = vmul.f32 %v338_v19, %v1706_v5  ;;  %s405_s9 = sld [smem:[#allocation2]] }
  0x7e   : > { %v335_v26 = vadd.f32 %v333_v17, %v313_v9  ;;  %v336_v27 = vadd.f32 %v334_v18, %v314_v10  ;;  %v346_v28 = vstv %s1700_s7  ;;  %v352_v29 = vstv %s1708_s29  ;;  %s1764_s17 = sld [smem:[#allocation3]] }
  0x7f   : > { %v341_v30 = vadd.f32 %v339_v24, %v319_v11  ;;  %v342_v31 = vadd.f32 %v340_v25, %v320_v13  ;;  %v347_v32 = vmul.f32 %v346_v28, %v1727_v20  ;;  %v348_v33 = vmul.f32 %v346_v28, %v1730_v21  ;;  %s1766_s28 = sld [smem:[#allocation3 + $0x10]] }
  0x80   : > { %v353_v36 = vmul.f32 %v352_v29, %v1727_v20  ;;  %v354_v37 = vmul.f32 %v352_v29, %v1730_v21  ;;  %v358_v38 = vstv %s1712_s12  ;;  %v366_v39 = vstv %s1717_s14  ;;  %s1768_s18 = sld [smem:[#allocation3 + $0x20]] }
  0x81   : > { %v349_v40 = vadd.f32 %v347_v32, %v329_v22  ;;  %v350_v41 = vadd.f32 %v348_v33, %v330_v23  ;;  %v359_v42 = vmul.f32 %v358_v38, %v1727_v20  ;;  %v360_v43 = vmul.f32 %v358_v38, %v1730_v21  ;;  %s1770_s27 = sld [smem:[#allocation3 + $0x1]] }
  0x82   : > { %v355_v44 = vadd.f32 %v353_v36, %v335_v26  ;;  %v356_v45 = vadd.f32 %v354_v37, %v336_v27  ;;  %v367_v46 = vmul.f32 %v366_v39, %v1741_v34  ;;  %v368_v47 = vmul.f32 %v366_v39, %v1744_v35  ;;  %s1772_s19 = sld [smem:[#allocation3 + $0x11]] }
  0x83   : > { %v361_v48 = vadd.f32 %v359_v42, %v341_v30  ;;  %v362_v49 = vadd.f32 %v360_v43, %v342_v31  ;;  %v372_v50 = vstv %s1722_s13  ;;  %v378_v51 = vstv %s1732_s16  ;;  %s1774_s3 = sld [smem:[#allocation3 + $0x21]] }
  0x84   : > { %v369_v52 = vadd.f32 %v367_v46, %v349_v40  ;;  %v370_v53 = vadd.f32 %v368_v47, %v350_v41  ;;  %v373_v54 = vmul.f32 %v372_v50, %v1741_v34  ;;  %v374_v55 = vmul.f32 %v372_v50, %v1744_v35  ;;  %2414 = sst [smem:[#allocation27_spill]] %s1764_s17 }
  0x85   : > { %v379_v56 = vmul.f32 %v378_v51, %v1741_v34  ;;  %v380_v57 = vmul.f32 %v378_v51, %v1744_v35  ;;  %v406_v12 = vstv %s405_s9  ;;  %s1776_s26 = sld [smem:[#allocation3 + $0x2]]  ;;  %v500_v51 = vstv %s1764_s17 }
  0x86   : > { %v375_v58 = vadd.f32 %v373_v54, %v355_v44  ;;  %v376_v59 = vadd.f32 %v374_v55, %v356_v45  ;;  %v385_v60 = vrot.slane %v369_v52, 7  ;;  %v386_v61 = vrot.slane %v370_v53, 7  ;;  %2415 = sst [smem:[#allocation28_spill]] %s1768_s18 }
  0x87   : > { %v381_v62 = vadd.f32 %v379_v56, %v361_v48  ;;  %v382_v63 = vadd.f32 %v380_v57, %v362_v49  ;;  %2416 = sst [smem:[#allocation29_spill]] %s1770_s27  ;;  %v506_v52 = vstv %s1766_s28  ;;  %v512_v53 = vstv %s1768_s18 }
  0x88   : > { %v390_v2 = vsel %vm389_vm0, 0.0, %v385_v60  ;;  %v391_v3 = vsel %vm389_vm0, 0.0, %v386_v61  ;;  %s1778_s6 = sld [smem:[#allocation3 + $0x12]]  ;;  %v518_v54 = vstv %s1770_s27  ;;  %v524_v55 = vstv %s1772_s19 }
  0x89   : > { %v392_v6 = vadd.f32 %v390_v2, %v375_v58  ;;  %v393_v7 = vadd.f32 %v391_v3, %v376_v59  ;;  %v396_v8 = vrot.slane %v381_v62, 1  ;;  %v397_v9 = vrot.slane %v382_v63, 1  ;;  %2417 = sst [smem:[#allocation30_spill]] %s1774_s3 }
  0x8a   : > { %s1780_s7 = sld [smem:[#allocation3 + $0x22]]  ;;  %v530_v56 = vstv %s1774_s3  ;;  %v1504_v63 = vmov 1966171168   ;;  %v2367_v3 = vlaneseq }
  0x8b   : > { %v401_v10 = vsel %vm400_vm1, %v396_v8, 0.0  ;;  %v402_v11 = vsel %vm400_vm1, %v397_v9, 0.0  ;;  %2418 = sst [smem:[#allocation31_spill]] %s1776_s26  ;;  %v536_v57 = vstv %s1776_s26  ;;  %v921_v2 = vunpack.c.l.s4 %v1504_v63 }
  0x8c   : > { %v403_v13 = vadd.f32 %v401_v10, %v392_v6  ;;  %v404_v14 = vadd.f32 %v402_v11, %v393_v7  ;;  %s1782_s29 = sld [smem:[#allocation3 + $0x3]] }
  0x8d   : > { %s1784_s12 = sld [smem:[#allocation3 + $0x13]] }
  0x8e   : > { %v407_v15 = vadd.f32 %v406_v12, %v403_v13  ;;  %v408_v16 = vadd.f32 %v406_v12, %v404_v14  ;;  %2419 = sst [smem:[#allocation32_spill]] %s1778_s6  ;;  %v542_v58 = vstv %s1778_s6 }
  0x8f   : > { %s1786_s14 = sld [smem:[#allocation3 + $0x23]] }
  0x90   : > { %v409_v17 = vrot.slane %v407_v15, 4  ;;  %v415_v18 = vrot.slane %v408_v16, 4  ;;  %2420 = sst [smem:[#allocation33_spill]] %s1780_s7  ;;  %v548_v59 = vstv %s1780_s7 }
  0x91   : > { %s1788_s13 = sld [smem:[#allocation3 + $0x4]] }
  0x92   : > { %v410_v19 = vmax.f32 %v407_v15, %v409_v17  ;;  %v416_v22 = vmax.f32 %v408_v16, %v415_v18  ;;  %2421 = sst [smem:[#allocation34_spill]] %s1782_s29  ;;  %v554_v60 = vstv %s1782_s29 }
  0x93   : > { %2422 = sst [smem:[#allocation35_spill]] %s1784_s12  ;;  %v560_v61 = vstv %s1784_s12 }
  0x94   : > { %v411_v23 = vrot.slane %v410_v19, 2  ;;  %v417_v24 = vrot.slane %v416_v22, 2  ;;  %s1790_s16 = sld [smem:[#allocation3 + $0x14]] }
  0x95   : > { %2423 = sst [smem:[#allocation36_spill]] %s1786_s14  ;;  %v566_v62 = vstv %s1786_s14 }
  0x96   : > { %v412_v25 = vmax.f32 %v410_v19, %v411_v23  ;;  %v418_v26 = vmax.f32 %v416_v22, %v417_v24  ;;  %s1792_s9 = sld [smem:[#allocation3 + $0x24]]  ;;  %v922_v22 = vunpack.c.0.s8 %v921_v2  ;;  %v924_v23 = vshrl.u32 %v2367_v3, 7 }
  0x97   : > { %2424 = sst [smem:[#allocation37_spill]] %s1788_s13  ;;  %v614_v6 = vstv %s1788_s13 }
  0x98   : > { %v413_v27 = vrot.slane %v412_v25, 1  ;;  %v419_v28 = vrot.slane %v418_v26, 1  ;;  %s1794_s0 = sld [smem:[#allocation3 + $0x5]] }
  0x99   : > { %s1796_s1 = sld [smem:[#allocation3 + $0x15]] }
  0x9a   : > { %v414_v29 = vmax.f32 %v412_v25, %v413_v27  ;;  %v420_v30 = vmax.f32 %v418_v26, %v419_v28  ;;  %2425 = sst [smem:[#allocation38_spill]] %s1790_s16  ;;  %v620_v7 = vstv %s1790_s16 }
  0x9b   : > { %s1798_s2 = sld [smem:[#allocation3 + $0x25]] }
  0x9c   : > { %v421_v31 = vsub.f32 %v407_v15, %v414_v29  ;;  %v422_v32 = vsub.f32 %v408_v16, %v420_v30  ;;  %2426 = sst [smem:[#allocation39_spill]] %s1792_s9 }
  0x9d   : > { %s1800_s4 = sld [smem:[#allocation3 + $0x6]] }
  0x9e   : > { %v423_v33 = vmul.f32 1.442695, %v421_v31  ;;  %v425_v36 = vmul.f32 1.442695, %v422_v32  ;;  %2427 = sst [smem:[#allocation40_spill]] %s1794_s0  ;;  %v632_v9 = vstv %s1794_s0 }
  0x9f   : > { %2428 = sst [smem:[#allocation41_spill]] %s1796_s1  ;;  %v638_v10 = vstv %s1796_s1 }
  0xa0   : > { %1327 = vpow2.f32 %v423_v33  ;;  %s1802_s8 = sld [smem:[#allocation3 + $0x16]] }
  0xa1   : > { %1329 = vpow2.f32 %v425_v36  ;;  %2429 = sst [smem:[#allocation42_spill]] %s1798_s2 }
  0xa2   : > { %s1804_s24 = sld [smem:[#allocation3 + $0x26]] }
  0xa3   : > { %2430 = sst [smem:[#allocation43_spill]] %s1800_s4  ;;  %v650_v12 = vstv %s1800_s4 }
  0xa4   : > { %s1806_s15 = sld [smem:[#allocation3 + $0x7]] }
  0xa5   : > { %s1808_s22 = sld [smem:[#allocation3 + $0x17]] }
  0xa6   : > { %2431 = sst [smem:[#allocation44_spill]] %s1802_s8  ;;  %v656_v13 = vstv %s1802_s8 }
  0xa7   : > { %s1810_s21 = sld [smem:[#allocation3 + $0x27]] }
  0xa8   : > { %s1812_s25 = sld [smem:[#allocation3 + $0x8]] }
  0xa9   : > { %s1814_s30 = sld [smem:[#allocation3 + $0x18]] }
  0xaa   : > { %s1818_s20 = sld [smem:[#allocation3 + $0x28]]  ;;  %v668_v15 = vstv %s1806_s15 }
  0xab   : > { %s1823_s5 = sld [smem:[#allocation3 + $0x9]]  ;;  %v674_v16 = vstv %s1808_s22 }
  0xac   : > { %s1826_s10 = sld [smem:[#allocation3 + $0x19]] }
  0xad   : > { %2432 = sst [smem:[#allocation45_spill]] %s1810_s21  ;;  %v1816_v37 = vpop.eup %1327 }
  0xae   : > { %v1820_v38 = vpop.eup %1329  ;;  %v427_v39 = vrot.slane %v1816_v37, 4  ;;  %s1829_s23 = sld [smem:[#allocation3 + $0x29]] }
  0xaf   : > { %2433 = sst [smem:[#allocation46_spill]] %s1814_s30  ;;  %v433_v40 = vrot.slane %v1820_v38, 4 }
  0xb0   : > { %2434 = sst [smem:[#allocation47_spill]] %s1818_s20  ;;  %v428_v41 = vadd.f32 %v1816_v37, %v427_v39 }
  0xb1   : > { %2435 = sst [smem:[#allocation48_spill]] %s1823_s5  ;;  %v434_v42 = vadd.f32 %v1820_v38, %v433_v40 }
  0xb2   : > { %2436 = sst [smem:[#allocation49_spill]] %s1826_s10  ;;  %v429_v43 = vrot.slane %v428_v41, 2 }
  0xb3   : > { %s1832_s11 = sld [smem:[#allocation3 + $0xa]]  ;;  %v435_v44 = vrot.slane %v434_v42, 2 }
  0xb4   : > { %2437 = sst [smem:[#allocation50_spill]] %s1829_s23  ;;  %v430_v45 = vadd.f32 %v429_v43, %v428_v41 }
  0xb5   : > { %s1834_s20 = sld [smem:[#allocation3 + $0x1a]]  ;;  %v436_v46 = vadd.f32 %v435_v44, %v434_v42  ;;  %v1914_v44 = vsub.s32 %v922_v22, %v924_v23 }
  0xb6   : > { %s1836_s30 = sld [smem:[#allocation3 + $0x2a]]  ;;  %v431_v47 = vrot.slane %v430_v45, 1 }
  0xb7   : > { %s1838_s5 = sld [smem:[#allocation3 + $0xb]]  ;;  %v437_v48 = vrot.slane %v436_v46, 1 }
  0xb8   : > { %s1840_s10 = sld [smem:[#allocation3 + $0x1b]]  ;;  %v432_v49 = vadd.f32 %v431_v47, %v430_v45 }
  0xb9   : > { %s1842_s23 = sld [smem:[#allocation3 + $0x2b]]  ;;  %v438_v50 = vadd.f32 %v437_v48, %v436_v46 }
  0xba   : > { %1331 = vrcp.f32 %v432_v49  ;;  %s1868_s17 = sld [smem:[#allocation3 + $0x1e]] }
  0xbb   : > { %2438 = sst [smem:[#allocation51_spill]] %s1834_s20  ;;  %1333 = vrcp.f32 %v438_v50 }
  0xbc   : > { %2439 = sst [smem:[#allocation52_spill]] %s1836_s30 }
  0xbd   : > { %2440 = sst [smem:[#allocation53_spill]] %s1838_s5 }
  0xbe   : > { %2441 = sst [smem:[#allocation54_spill]] %s1840_s10 }
  0xbf   : > { %2442 = sst [smem:[#allocation55_spill]] %s1842_s23 }
  0xc0   : > { %s1844_s20 = sld [smem:[#allocation3 + $0xc]] }
  0xc1   : > { %s1846_s30 = sld [smem:[#allocation3 + $0x1c]] }
  0xc2   : > { %s1848_s5 = sld [smem:[#allocation3 + $0x2c]] }
  0xc3   : > { %s1850_s10 = sld [smem:[#allocation3 + $0xd]] }
  0xc4   : > { %s1852_s23 = sld [smem:[#allocation3 + $0x1d]] }
  0xc5   : > { %2446 = sst [smem:[#allocation59_spill]] %s1868_s17 }
  0xc6   : > { %2443 = sst [smem:[#allocation56_spill]] %s1844_s20 }
  0xc7   : > { %s1856_s20 = sld [smem:[#allocation3 + $0x2d]]  ;;  %v1332_v40 = vpop.eup %1331 }
  0xc8   : > { %2444 = sst [smem:[#allocation57_spill]] %s1848_s5  ;;  %v1334_v45 = vpop.eup %1333  ;;  %v1917_v46 = vmul.f32 %v1332_v40, %v1816_v37 }
  0xc9   : > { %s1862_s5 = sld [smem:[#allocation3 + $0xe]]  ;;  %v1923_v50 = vmul.f32 %v1334_v45, %v1820_v38 }
  0xca   : > { %s1872_s18 = sld [smem:[#allocation3 + $0x2e]]  ;;  %v445_v41 = vrot.slane %v1917_v46, 1  ;;  %v451_v22 = vrot.slane %v1917_v46, 7  ;;  %v471_v23 = vmul.f32 %v1917_v46, %v1695_v0 }
  0xcb   : > { %s2448_s3 = sld [smem:[#allocation46_spill]]  ;;  %v446_v37 = vrot.slane %v1923_v50, 1  ;;  %v452_v40 = vrot.slane %v1923_v50, 7  ;;  %v472_v49 = vmul.f32 %v1923_v50, %v1698_v1 }
  0xcc   : > { %s1878_s29 = sld [smem:[#allocation3 + $0xf]]  ;;  %v1939_v45 = vsel %vm400_vm1, %v445_v41, 0.0  ;;  %v1942_v3 = vsel %vm389_vm0, 0.0, %v451_v22  ;;  %v473_v63 = vrot.slane %v471_v23, 4 }
  0xcd   : > { %2445 = sst [smem:[#allocation58_spill]] %s1856_s20  ;;  %v1946_v39 = vsel %vm400_vm1, %v446_v37, 0.0  ;;  %v1949_v43 = vsel %vm389_vm0, 0.0, %v452_v40  ;;  %v457_v2 = vmul.f32 %v1939_v45, %v1695_v0  ;;  %v479_v48 = vrot.slane %v472_v49, 4 }
  0xce   : > { %s2449_s7 = sld [smem:[#allocation47_spill]]  ;;  %v458_v38 = vmul.f32 %v1946_v39, %v1698_v1  ;;  %v474_v41 = vadd.f32 %v473_v63, %v471_v23  ;;  %v485_v22 = vmul.f32 %v1942_v3, %v1695_v0  ;;  %v486_v47 = vmul.f32 %v1949_v43, %v1698_v1 }
  0xcf   : > { %s2450_s12 = sld [smem:[#allocation48_spill]]  ;;  %v459_v42 = vrot.slane %v457_v2, 4  ;;  %v480_v37 = vadd.f32 %v479_v48, %v472_v49  ;;  %v571_v40 = vmul.f32 %v1939_v45, %v1703_v4  ;;  %v572_v36 = vmul.f32 %v1946_v39, %v1706_v5 }
  0xd0   : > { %2447 = sst [smem:[#allocation60_spill]] %s1872_s18  ;;  %v465_v33 = vrot.slane %v458_v38, 4  ;;  %v475_v32 = vrot.slane %v474_v41, 2  ;;  %v487_v31 = vrot.slane %v485_v22, 4  ;;  %v493_v30 = vrot.slane %v486_v47, 4 }
  0xd1   : > { %s2451_s14 = sld [smem:[#allocation49_spill]]  ;;  %v460_v29 = vadd.f32 %v459_v42, %v457_v2  ;;  %v481_v63 = vrot.slane %v480_v37, 2  ;;  %v573_v23 = vrot.slane %v571_v40, 4  ;;  %v579_v27 = vrot.slane %v572_v36, 4 }
  0xd2   : > { %s2452_s26 = sld [smem:[#allocation50_spill]]  ;;  %v466_v0 = vadd.f32 %v465_v33, %v458_v38  ;;  %v476_v28 = vadd.f32 %v475_v32, %v474_v41  ;;  %v488_v26 = vadd.f32 %v487_v31, %v485_v22  ;;  %v494_v1 = vadd.f32 %v493_v30, %v486_v47 }
  0xd3   : > { %s1884_s27 = sld [smem:[#allocation3 + $0x1f]]  ;;  %v461_v24 = vrot.slane %v460_v29, 2  ;;  %v482_v48 = vadd.f32 %v481_v63, %v480_v37  ;;  %v574_v49 = vadd.f32 %v573_v23, %v571_v40  ;;  %v580_v19 = vadd.f32 %v579_v27, %v572_v36 }
  0xd4   : > { %s2454_s6 = sld [smem:[#allocation51_spill]]  ;;  %v467_v25 = vrot.slane %v466_v0, 2  ;;  %v477_v18 = vrot.slane %v476_v28, 1  ;;  %v489_v17 = vrot.slane %v488_v26, 2  ;;  %v495_v14 = vrot.slane %v494_v1, 2 }
  0xd5   : > { %s2455_s13 = sld [smem:[#allocation52_spill]]  ;;  %v462_v11 = vadd.f32 %v461_v24, %v460_v29  ;;  %v483_v8 = vrot.slane %v482_v48, 1  ;;  %v575_v42 = vrot.slane %v574_v49, 2  ;;  %v585_v33 = vmul.f32 %v1917_v46, %v1703_v4 }
  0xd6   : > { %s2456_s9 = sld [smem:[#allocation53_spill]]  ;;  %v468_v31 = vadd.f32 %v467_v25, %v466_v0  ;;  %v478_v30 = vadd.f32 %v477_v18, %v476_v28  ;;  %v490_v32 = vadd.f32 %v489_v17, %v488_v26  ;;  %v496_v47 = vadd.f32 %v495_v14, %v494_v1 }
  0xd7   : > { %s2457_s16 = sld [smem:[#allocation54_spill]]  ;;  %v463_v27 = vrot.slane %v462_v11, 1  ;;  %v484_v36 = vadd.f32 %v483_v8, %v482_v48  ;;  %v576_v2 = vadd.f32 %v575_v42, %v574_v49  ;;  %v581_v24 = vrot.slane %v580_v19, 2 }
  0xd8   : > { %s1890_s0 = sld [smem:[#allocation3 + $0x2f]]  ;;  %v469_v29 = vrot.slane %v468_v31, 1  ;;  %v491_v38 = vrot.slane %v490_v32, 1  ;;  %v497_v41 = vrot.slane %v496_v47, 1  ;;  %v507_v25 = vmul.f32 %v506_v52, %v478_v30 }
  0xd9   : > { %2453 = sst [smem:[#allocation46_spill]] %s1884_s27  ;;  %v464_v17 = vadd.f32 %v463_v27, %v462_v11  ;;  %v508_v14 = vmul.f32 %v506_v52, %v484_v36  ;;  %v525_v18 = vmul.f32 %v524_v55, %v478_v30  ;;  %v526_v8 = vmul.f32 %v524_v55, %v484_v36 }
  0xda   : > { %s2459_s1 = sld [smem:[#allocation55_spill]]  ;;  %v470_v26 = vadd.f32 %v469_v29, %v468_v31  ;;  %v492_v28 = vadd.f32 %v491_v38, %v490_v32  ;;  %v498_v22 = vadd.f32 %v497_v41, %v496_v47  ;;  %v543_v37 = vmul.f32 %v542_v58, %v478_v30 }
  0xdb   : > { %s2460_s2 = sld [smem:[#allocation56_spill]]  ;;  %v501_v40 = vmul.f32 %v500_v51, %v464_v17  ;;  %v519_v63 = vmul.f32 %v518_v54, %v464_v17  ;;  %v537_v11 = vmul.f32 %v536_v57, %v464_v17  ;;  %v544_v52 = vmul.f32 %v542_v58, %v484_v36 }
  0xdc   : > { %s1894_s4 = sld [smem:[#allocation7]]  ;;  %v502_v23 = vmul.f32 %v500_v51, %v470_v26  ;;  %v513_v55 = vmul.f32 %v512_v53, %v492_v28  ;;  %v514_v0 = vmul.f32 %v512_v53, %v498_v22  ;;  %v520_v1 = vmul.f32 %v518_v54, %v470_v26 }
  0xdd   : > { %s2462_s8 = sld [smem:[#allocation57_spill]]  ;;  %v509_v48 = vadd.f32 %v507_v25, %v501_v40  ;;  %v527_v49 = vadd.f32 %v525_v18, %v519_v63  ;;  %v531_v42 = vmul.f32 %v530_v56, %v492_v28  ;;  %v532_v31 = vmul.f32 %v530_v56, %v498_v22 }
  0xde   : > { %2458 = sst [smem:[#allocation47_spill]] %s1890_s0  ;;  %v510_v58 = vadd.f32 %v508_v14, %v502_v23  ;;  %v528_v32 = vadd.f32 %v526_v8, %v520_v1  ;;  %v538_v51 = vmul.f32 %v536_v57, %v470_v26  ;;  %v545_v47 = vadd.f32 %v543_v37, %v537_v11 }
  0xdf   : > { %s1901_s21 = sld [smem:[#allocation7 + $0x1]]  ;;  %v549_v53 = vmul.f32 %v548_v59, %v492_v28  ;;  %v582_v27 = vadd.f32 %v581_v24, %v580_v19  ;;  %v586_v54 = vmul.f32 %v1923_v50, %v1706_v5  ;;  %v587_v29 = vrot.slane %v585_v33, 4 }
  0xe0   : > { %v515_v38 = vadd.f32 %v513_v55, %v509_v48  ;;  %v533_v41 = vadd.f32 %v531_v42, %v527_v49  ;;  %v550_v25 = vmul.f32 %v548_v59, %v498_v22  ;;  %v555_v56 = vmul.f32 %v554_v60, %v464_v17  ;;  %s2039_s28 = sld [smem:[#allocation7 + $0x2]] }
  0xe1   : > { %v516_v18 = vadd.f32 %v514_v0, %v510_v58  ;;  %v556_v14 = vmul.f32 %v554_v60, %v470_v26  ;;  %v561_v57 = vmul.f32 %v560_v61, %v478_v30  ;;  %v562_v8 = vmul.f32 %v560_v61, %v484_v36  ;;  %s2480_s19 = sld [smem:[#allocation39_spill]] }
  0xe2   : > { %2461 = sst [smem:[#allocation48_spill]] %s1894_s4  ;;  %v534_v19 = vadd.f32 %v532_v31, %v528_v32  ;;  %v546_v24 = vadd.f32 %v544_v52, %v538_v51  ;;  %v551_v37 = vadd.f32 %v549_v53, %v545_v47  ;;  %v577_v40 = vrot.slane %v576_v2, 1  ;;  %s1505_s4 = smov [#allocation11]  }
  0xe3   : > { %v563_v63 = vadd.f32 %v561_v57, %v555_v56  ;;  %v567_v11 = vmul.f32 %v566_v62, %v492_v28  ;;  %v583_v23 = vrot.slane %v582_v27, 1  ;;  %v588_v59 = vadd.f32 %v587_v29, %v585_v33  ;;  %s2481_s0 = sld [smem:[#allocation42_spill]]  ;;  %s1412_s20 = sshll.u32 %s1505_s4, 4  ;;  %s1413_s20 = int_to_ptr.vmem [resolvable:$false] %s1412_s20 }
  0xe4   : > { %v578_v17 = vadd.f32 %v577_v40, %v576_v2  ;;  %v593_v55 = vrot.slane %v586_v54, 4  ;;  %v599_v60 = vmul.f32 %v1942_v3, %v1703_v4  ;;  %v600_v30 = vmul.f32 %v1949_v43, %v1706_v5  ;;  %s2488_s22 = sld [smem:[#allocation45_spill]] }
  0xe5   : > { %2463 = sst [smem:[#allocation49_spill]] %s1901_s21  ;;  %v564_v61 = vadd.f32 %v562_v8, %v556_v14  ;;  %v568_v36 = vmul.f32 %v566_v62, %v498_v22  ;;  %v584_v26 = vadd.f32 %v583_v23, %v582_v27  ;;  %v589_v52 = vrot.slane %v588_v59, 2  ;;  %s1414_s21 = scalar_lea.vmem %s1413_s20, 256 }
  0xe6   : > { %v594_v0 = vadd.f32 %v593_v55, %v586_v54  ;;  %v601_v28 = vrot.slane %v599_v60, 4  ;;  %v607_v1 = vrot.slane %v600_v30, 4  ;;  %v615_v33 = vmul.f32 %v614_v6, %v578_v17 }
  0xe7   : > { %v552_v2 = vadd.f32 %v550_v25, %v546_v24  ;;  %v569_v48 = vadd.f32 %v567_v11, %v563_v63  ;;  %v590_v49 = vadd.f32 %v589_v52, %v588_v59  ;;  %v616_v4 = vmul.f32 %v614_v6, %v584_v26 }
  0xe8   : > { %v595_v5 = vrot.slane %v594_v0, 2  ;;  %v602_v42 = vadd.f32 %v601_v28, %v599_v60  ;;  %v608_v31 = vadd.f32 %v607_v1, %v600_v30  ;;  %v633_v62 = vmul.f32 %v632_v9, %v578_v17 }
  0xe9   : > { %v570_v22 = vadd.f32 %v568_v36, %v564_v61  ;;  %v591_v58 = vrot.slane %v590_v49, 1  ;;  %v617_v32 = vadd.f32 %v615_v33, %v515_v38  ;;  %v634_v51 = vmul.f32 %v632_v9, %v584_v26 }
  0xea   : > { %v596_v47 = vadd.f32 %v595_v5, %v594_v0  ;;  %v603_v53 = vrot.slane %v602_v42, 2  ;;  %v609_v27 = vrot.slane %v608_v31, 2  ;;  %v651_v54 = vmul.f32 %v650_v12, %v578_v17 }
  0xeb   : > { %v592_v6 = vadd.f32 %v591_v58, %v590_v49  ;;  %v618_v29 = vadd.f32 %v616_v4, %v516_v18  ;;  %v652_v25 = vmul.f32 %v650_v12, %v584_v26  ;;  %v669_v56 = vmul.f32 %v668_v15, %v578_v17 }
  0xec   : > { %v597_v14 = vrot.slane %v596_v47, 1  ;;  %v604_v57 = vadd.f32 %v603_v53, %v602_v42  ;;  %v610_v8 = vadd.f32 %v609_v27, %v608_v31  ;;  %v635_v24 = vadd.f32 %v633_v62, %v533_v41 }
  0xed   : > { %v621_v9 = vmul.f32 %v620_v7, %v592_v6  ;;  %v639_v38 = vmul.f32 %v638_v10, %v592_v6  ;;  %v653_v40 = vadd.f32 %v651_v54, %v551_v37  ;;  %v657_v63 = vmul.f32 %v656_v13, %v592_v6 }
  0xee   : > { %v598_v12 = vadd.f32 %v597_v14, %v596_v47  ;;  %v605_v18 = vrot.slane %v604_v57, 1  ;;  %v611_v11 = vrot.slane %v610_v8, 1  ;;  %v636_v23 = vadd.f32 %v634_v51, %v534_v19 }
  0xef   : > { %v623_v41 = vadd.f32 %v621_v9, %v617_v32  ;;  %v654_v59 = vadd.f32 %v652_v25, %v552_v2  ;;  %v670_v17 = vmul.f32 %v668_v15, %v584_v26  ;;  %v671_v37 = vadd.f32 %v669_v56, %v569_v48 }
  0xf0   : > { %v606_v55 = vadd.f32 %v605_v18, %v604_v57  ;;  %v2043_v60 = vadd.f32 %v611_v11, %v610_v8  ;;  %v622_v30 = vmul.f32 %v620_v7, %v598_v12  ;;  %v640_v61 = vmul.f32 %v638_v10, %v598_v12 }
  0xf1   : > { %v641_v36 = vadd.f32 %v639_v38, %v635_v24  ;;  %v658_v19 = vmul.f32 %v656_v13, %v598_v12  ;;  %v659_v52 = vadd.f32 %v657_v63, %v653_v40  ;;  %v675_v0 = vmul.f32 %v674_v16, %v592_v6 }
  0xf2   : > { %v624_v28 = vadd.f32 %v622_v30, %v618_v29  ;;  %v2482_v15 = vstv %s2480_s19  ;;  %v642_v2 = vadd.f32 %v640_v61, %v636_v23  ;;  %v2484_v48 = vstv %s2481_s0 }
  0xf3   : > { %v627_v26 = vmul.f32 %v2482_v15, %v606_v55  ;;  %v2483_v1 = vmov %v2482_v15  ;;  %v645_v49 = vmul.f32 %v2484_v48, %v606_v55  ;;  %v2485_v7 = vmov %v2484_v48 }
  0xf4   : > { %v628_v33 = vmul.f32 %v2483_v1, %v2043_v60  ;;  %v646_v10 = vmul.f32 %v2485_v7, %v2043_v60  ;;  %v2486_v4 = vstv %s1804_s24  ;;  %v685_v13 = vmul.f32 %v1939_v45, %v1727_v20  ;;  %s2193_s24 = sld [smem:[#allocation7 + $0x3]] }
  0xf5   : > { %v663_v5 = vmul.f32 %v2486_v4, %v606_v55  ;;  %v660_v42 = vadd.f32 %v658_v19, %v654_v59  ;;  %v2487_v31 = vmov %v2486_v4  ;;  %v672_v58 = vadd.f32 %v670_v17, %v570_v22 }
  0xf6   : > { %v664_v62 = vmul.f32 %v2487_v31, %v2043_v60  ;;  %v676_v32 = vmul.f32 %v674_v16, %v598_v12  ;;  %v2072_v51 = vadd.f32 %v627_v26, %v623_v41  ;;  %v2074_v47 = vadd.f32 %v628_v33, %v624_v28 }
  0xf7   : > { %v677_v53 = vadd.f32 %v675_v0, %v671_v37  ;;  %v965_v27 = vstv %s2039_s28  ;;  %v2077_v54 = vadd.f32 %v645_v49, %v641_v36  ;;  %v2079_v6 = vadd.f32 %v646_v10, %v642_v2 }
  0xf8   : > { %v2081_v29 = vadd.f32 %v663_v5, %v659_v52  ;;  %v686_v25 = vmul.f32 %v1946_v39, %v1730_v21  ;;  %v687_v56 = vrot.slane %v685_v13, 4  ;;  %v699_v22 = vmul.f32 %v1917_v46, %v1727_v20 }
  0xf9   : > { %v700_v16 = vmul.f32 %v1923_v50, %v1730_v21  ;;  %v713_v14 = vmul.f32 %v1942_v3, %v1727_v20  ;;  %v2091_v57 = vadd.f32 %v664_v62, %v660_v42  ;;  %v2093_v8 = vadd.f32 %v676_v32, %v672_v58 }
  0xfa   : > { %v693_v24 = vrot.slane %v686_v25, 4  ;;  %v714_v9 = vmul.f32 %v1949_v43, %v1730_v21  ;;  %v688_v38 = vadd.f32 %v687_v56, %v685_v13  ;;  %v701_v40 = vrot.slane %v699_v22, 4 }
  0xfb   : > { %v707_v63 = vrot.slane %v700_v16, 4  ;;  %v715_v12 = vrot.slane %v713_v14, 4  ;;  %v799_v23 = vmul.f32 %v1939_v45, %v1741_v34  ;;  %v800_v20 = vmul.f32 %v1946_v39, %v1744_v35 }
  0xfc   : > { %v694_v18 = vadd.f32 %v693_v24, %v686_v25  ;;  %v721_v11 = vrot.slane %v714_v9, 4  ;;  %v689_v41 = vrot.slane %v688_v38, 2  ;;  %v702_v59 = vadd.f32 %v701_v40, %v699_v22 }
  0xfd   : > { %v708_v17 = vadd.f32 %v707_v63, %v700_v16  ;;  %v716_v37 = vadd.f32 %v715_v12, %v713_v14  ;;  %v801_v61 = vrot.slane %v799_v23, 4  ;;  %v807_v36 = vrot.slane %v800_v20, 4 }
  0xfe   : > { %v695_v30 = vrot.slane %v694_v18, 2  ;;  %v722_v21 = vadd.f32 %v721_v11, %v714_v9  ;;  %v690_v19 = vadd.f32 %v689_v41, %v688_v38  ;;  %v703_v52 = vrot.slane %v702_v59, 2 }
  0xff   : > { %v709_v0 = vrot.slane %v708_v17, 2  ;;  %v717_v28 = vrot.slane %v716_v37, 2  ;;  %v2489_v15 = vstv %s2488_s22  ;;  %v802_v33 = vadd.f32 %v801_v61, %v799_v23 }
 0x100   : > { %v681_v26 = vmul.f32 %v2489_v15, %v606_v55  ;;  %v696_v1 = vadd.f32 %v695_v30, %v694_v18  ;;  %v723_v45 = vrot.slane %v722_v21, 2  ;;  %v691_v2 = vrot.slane %v690_v19, 1 }
 0x101   : > { %v704_v39 = vadd.f32 %v703_v52, %v702_v59  ;;  %v710_v48 = vadd.f32 %v709_v0, %v708_v17  ;;  %v718_v49 = vadd.f32 %v717_v28, %v716_v37  ;;  %v2490_v7 = vmov %v2489_v15 }
 0x102   : > { %v682_v10 = vmul.f32 %v2490_v7, %v2043_v60  ;;  %v697_v4 = vrot.slane %v696_v1, 1  ;;  %v724_v5 = vadd.f32 %v723_v45, %v722_v21  ;;  %v808_v13 = vadd.f32 %v807_v36, %v800_v20 }
 0x103   : > { %v692_v42 = vadd.f32 %v691_v2, %v690_v19  ;;  %v705_v31 = vrot.slane %v704_v39, 1  ;;  %v711_v55 = vrot.slane %v710_v48, 1  ;;  %v719_v62 = vrot.slane %v718_v49, 1 }
 0x104   : > { %v683_v58 = vadd.f32 %v681_v26, %v677_v53  ;;  %v698_v32 = vadd.f32 %v697_v4, %v696_v1  ;;  %v725_v25 = vrot.slane %v724_v5, 1  ;;  %v803_v56 = vrot.slane %v802_v33, 2 }
 0x105   : > { %v706_v22 = vadd.f32 %v705_v31, %v704_v39  ;;  %v712_v60 = vadd.f32 %v711_v55, %v710_v48  ;;  %v720_v16 = vadd.f32 %v719_v62, %v718_v49  ;;  %v2491_v14 = vstv %s1812_s25  ;;  %s2534_s25 = sld [smem:[#allocation46_spill]] }
 0x106   : > { %v729_v24 = vmul.f32 %v2491_v14, %v692_v42  ;;  %v726_v9 = vadd.f32 %v725_v25, %v724_v5  ;;  %v2492_v38 = vmov %v2491_v14  ;;  %v2493_v63 = vstv %s2450_s12 }
 0x107   : > { %v730_v40 = vmul.f32 %v2492_v38, %v698_v32  ;;  %v747_v12 = vmul.f32 %v2493_v63, %v692_v42  ;;  %v2494_v18 = vmov %v2493_v63  ;;  %v2495_v23 = vstv %s2448_s3 }
 0x108   : > { %v748_v53 = vmul.f32 %v2494_v18, %v698_v32  ;;  %v731_v11 = vadd.f32 %v729_v24, %v2072_v51  ;;  %v735_v20 = vmul.f32 %v2495_v23, %v706_v22  ;;  %v2496_v41 = vmov %v2495_v23 }
 0x109   : > { %v736_v59 = vmul.f32 %v2496_v41, %v712_v60  ;;  %v809_v17 = vrot.slane %v808_v13, 2  ;;  %v732_v37 = vadd.f32 %v730_v40, %v2074_v47  ;;  %v2497_v30 = vstv %s2449_s7 }
 0x10a   : > { %v741_v21 = vmul.f32 %v2497_v30, %v720_v16  ;;  %v2498_v61 = vmov %v2497_v30  ;;  %v749_v19 = vadd.f32 %v747_v12, %v2077_v54  ;;  %v737_v52 = vadd.f32 %v735_v20, %v731_v11 }
 0x10b   : > { %v742_v36 = vmul.f32 %v2498_v61, %v726_v9  ;;  %v750_v51 = vadd.f32 %v748_v53, %v2079_v6  ;;  %v2499_v0 = vstv %s2451_s14  ;;  %v684_v1 = vadd.f32 %v682_v10, %v2093_v8  ;;  %s2556_s14 = sld [smem:[#allocation65_spill]] }
 0x10c   : > { %v753_v28 = vmul.f32 %v2499_v0, %v706_v22  ;;  %v2500_v15 = vmov %v2499_v0  ;;  %v738_v45 = vadd.f32 %v736_v59, %v732_v37  ;;  %v2501_v47 = vstv %s1832_s11  ;;  %s2551_s11 = sld [smem:[#allocation19_spill]] }
 0x10d   : > { %v754_v26 = vmul.f32 %v2500_v15, %v712_v60  ;;  %v765_v2 = vmul.f32 %v2501_v47, %v692_v42  ;;  %v2502_v39 = vmov %v2501_v47  ;;  %v2503_v49 = vstv %s2452_s26 }
 0x10e   : > { %v766_v48 = vmul.f32 %v2502_v39, %v698_v32  ;;  %v759_v54 = vmul.f32 %v2503_v49, %v720_v16  ;;  %v2504_v7 = vstv %s2454_s6  ;;  %v804_v6 = vadd.f32 %v803_v56, %v802_v33 }
 0x10f   : > { %v771_v4 = vmul.f32 %v2504_v7, %v706_v22  ;;  %v810_v5 = vadd.f32 %v809_v17, %v808_v13  ;;  %v2505_v31 = vmov %v2503_v49  ;;  %v767_v8 = vadd.f32 %v765_v2, %v2081_v29 }
 0x110   : > { %v760_v55 = vmul.f32 %v2505_v31, %v726_v9  ;;  %v768_v10 = vadd.f32 %v766_v48, %v2091_v57  ;;  %v2506_v62 = vmov %v2504_v7  ;;  %v743_v14 = vadd.f32 %v741_v21, %v737_v52 }
 0x111   : > { %v772_v25 = vmul.f32 %v2506_v62, %v712_v60  ;;  %v744_v24 = vadd.f32 %v742_v36, %v738_v45  ;;  %v755_v38 = vadd.f32 %v753_v28, %v749_v19  ;;  %v756_v40 = vadd.f32 %v754_v26, %v750_v51 }
 0x112   : > { %v2507_v63 = vstv %s2455_s13  ;;  %v2509_v13 = vstv %s2456_s9  ;;  %v773_v23 = vadd.f32 %v771_v4, %v767_v8  ;;  %v2511_v20 = vstv %s2457_s16  ;;  %s1230_s6 = sshll.u32 %s2551_s11, 7 }
 0x113   : > { %v777_v12 = vmul.f32 %v2507_v63, %v720_v16  ;;  %v2508_v33 = vmov %v2507_v63  ;;  %v783_v18 = vmul.f32 %v2509_v13, %v692_v42  ;;  %v2510_v53 = vmov %v2509_v13  ;;  %s1027_s13 = scalar_lea.hbm %s2556_s14, %s1230_s6 }
 0x114   : > { %v778_v56 = vmul.f32 %v2508_v33, %v726_v9  ;;  %v784_v11 = vmul.f32 %v2510_v53, %v698_v32  ;;  %v774_v29 = vadd.f32 %v772_v25, %v768_v10  ;;  %v789_v57 = vmul.f32 %v2511_v20, %v706_v22 }
 0x115   : > { %v2512_v41 = vmov %v2511_v20  ;;  %v785_v17 = vadd.f32 %v783_v18, %v683_v58  ;;  %v2513_v30 = vstv %s2459_s1  ;;  %v805_v19 = vrot.slane %v804_v6, 1  ;;  %s2523_s1 = sld [smem:[#allocation58_spill]] }
 0x116   : > { %v790_v59 = vmul.f32 %v2512_v41, %v712_v60  ;;  %v786_v37 = vadd.f32 %v784_v11, %v684_v1  ;;  %v795_v21 = vmul.f32 %v2513_v30, %v720_v16  ;;  %v2514_v61 = vmov %v2513_v30 }
 0x117   : > { %v796_v36 = vmul.f32 %v2514_v61, %v726_v9  ;;  %v811_v52 = vrot.slane %v810_v5, 1  ;;  %v813_v51 = vmul.f32 %v1917_v46, %v1741_v34  ;;  %v814_v42 = vmul.f32 %v1923_v50, %v1744_v35 }
 0x118   : > { %v791_v32 = vadd.f32 %v789_v57, %v785_v17  ;;  %v792_v0 = vadd.f32 %v790_v59, %v786_v37  ;;  %v827_v22 = vmul.f32 %v1942_v3, %v1741_v34  ;;  %v828_v58 = vmul.f32 %v1949_v43, %v1744_v35 }
 0x119   : > { %v806_v60 = vadd.f32 %v805_v19, %v804_v6  ;;  %v812_v16 = vadd.f32 %v811_v52, %v810_v5  ;;  %v815_v28 = vrot.slane %v813_v51, 4  ;;  %v821_v9 = vrot.slane %v814_v42, 4 }
 0x11a   : > { %v761_v15 = vadd.f32 %v759_v54, %v755_v38  ;;  %v762_v26 = vadd.f32 %v760_v55, %v756_v40  ;;  %v829_v46 = vrot.slane %v827_v22, 4  ;;  %v835_v1 = vrot.slane %v828_v58, 4 }
 0x11b   : > { %v779_v50 = vadd.f32 %v777_v12, %v773_v23  ;;  %v780_v45 = vadd.f32 %v778_v56, %v774_v29  ;;  %v816_v47 = vadd.f32 %v815_v28, %v813_v51  ;;  %v822_v34 = vadd.f32 %v821_v9, %v814_v42 }
 0x11c   : > { %v797_v3 = vadd.f32 %v795_v21, %v791_v32  ;;  %v798_v35 = vadd.f32 %v796_v36, %v792_v0  ;;  %v830_v43 = vadd.f32 %v829_v46, %v827_v22  ;;  %v836_v2 = vadd.f32 %v835_v1, %v828_v58 }
 0x11d   : > { %v817_v39 = vrot.slane %v816_v47, 2  ;;  %v823_v48 = vrot.slane %v822_v34, 2  ;;  %v2515_v49 = vstv %s2460_s2  ;;  %v2517_v31 = vstv %s1850_s10  ;;  %s2524_s2 = sld [smem:[#allocation59_spill]] }
 0x11e   : > { %v843_v54 = vmul.f32 %v2515_v49, %v806_v60  ;;  %v2516_v7 = vmov %v2515_v49  ;;  %v831_v6 = vrot.slane %v830_v43, 2  ;;  %v837_v5 = vrot.slane %v836_v2, 2  ;;  %s2536_s10 = sld [smem:[#allocation48_spill]] }
 0x11f   : > { %v844_v4 = vmul.f32 %v2516_v7, %v812_v16  ;;  %v861_v55 = vmul.f32 %v2517_v31, %v806_v60  ;;  %v2518_v8 = vmov %v2517_v31  ;;  %v818_v62 = vadd.f32 %v817_v39, %v816_v47 }
 0x120   : > { %v862_v10 = vmul.f32 %v2518_v8, %v812_v16  ;;  %v824_v25 = vadd.f32 %v823_v48, %v822_v34  ;;  %v2519_v38 = vstv %s1862_s5  ;;  %v832_v33 = vadd.f32 %v831_v6, %v830_v43  ;;  %s2526_s5 = sld [smem:[#allocation60_spill]] }
 0x121   : > { %v879_v40 = vmul.f32 %v2519_v38, %v806_v60  ;;  %v2520_v63 = vmov %v2519_v38  ;;  %v838_v56 = vadd.f32 %v837_v5, %v836_v2  ;;  %v2521_v13 = vstv %s1878_s29 }
 0x122   : > { %v880_v12 = vmul.f32 %v2520_v63, %v812_v16  ;;  %v897_v18 = vmul.f32 %v2521_v13, %v806_v60  ;;  %v2522_v53 = vmov %v2521_v13  ;;  %v819_v23 = vrot.slane %v818_v62, 1 }
 0x123   : > { %v898_v11 = vmul.f32 %v2522_v53, %v812_v16  ;;  %v825_v29 = vrot.slane %v824_v25, 1  ;;  %v845_v20 = vadd.f32 %v843_v54, %v743_v14  ;;  %v846_v57 = vadd.f32 %v844_v4, %v744_v24 }
 0x124   : > { %v833_v41 = vrot.slane %v832_v33, 1  ;;  %v839_v59 = vrot.slane %v838_v56, 1  ;;  %v863_v17 = vadd.f32 %v861_v55, %v761_v15  ;;  %v864_v37 = vadd.f32 %v862_v10, %v762_v26 }
 0x125   : > { %v820_v30 = vadd.f32 %v819_v23, %v818_v62  ;;  %v826_v21 = vadd.f32 %v825_v29, %v824_v25  ;;  %v881_v61 = vadd.f32 %v879_v40, %v779_v50  ;;  %v882_v36 = vadd.f32 %v880_v12, %v780_v45 }
 0x126   : > { %v834_v19 = vadd.f32 %v833_v41, %v832_v33  ;;  %v840_v52 = vadd.f32 %v839_v59, %v838_v56  ;;  %v899_v51 = vadd.f32 %v897_v18, %v797_v3  ;;  %v900_v14 = vadd.f32 %v898_v11, %v798_v35 }
 0x127   : > { %v2525_v24 = vstv %s1846_s30  ;;  %v2528_v22 = vstv %s1852_s23  ;;  %v2530_v28 = vstv %s2462_s8  ;;  %v2532_v46 = vstv %s2523_s1  ;;  %s2535_s30 = sld [smem:[#allocation47_spill]] }
 0x128   : > { %v849_v42 = vmul.f32 %v2525_v24, %v820_v30  ;;  %v2527_v32 = vmov %v2525_v24  ;;  %v867_v58 = vmul.f32 %v2528_v22, %v820_v30  ;;  %v2529_v60 = vmov %v2528_v22  ;;  %s2541_s23 = sld [smem:[#allocation26_spill]] }
 0x129   : > { %v850_v0 = vmul.f32 %v2527_v32, %v826_v21  ;;  %v868_v16 = vmul.f32 %v2529_v60, %v826_v21  ;;  %v855_v9 = vmul.f32 %v2530_v28, %v834_v19  ;;  %v2531_v15 = vmov %v2530_v28  ;;  %s2542_s8 = sld [smem:[#allocation49_spill]] }
 0x12a   : > { %v856_v26 = vmul.f32 %v2531_v15, %v840_v52  ;;  %v873_v1 = vmul.f32 %v2532_v46, %v834_v19  ;;  %v2533_v50 = vmov %v2532_v46  ;;  %v851_v47 = vadd.f32 %v849_v42, %v845_v20 }
 0x12b   : > { %v874_v45 = vmul.f32 %v2533_v50, %v840_v52  ;;  %v852_v34 = vadd.f32 %v850_v0, %v846_v57  ;;  %v869_v3 = vadd.f32 %v867_v58, %v863_v17  ;;  %v870_v35 = vadd.f32 %v868_v16, %v864_v37 }
 0x12c   : > { %v2537_v43 = vstv %s2524_s2  ;;  %v2539_v49 = vstv %s2526_s5  ;;  %v857_v6 = vadd.f32 %v855_v9, %v851_v47  ;;  %v2543_v62 = vstv %s2534_s25 }
 0x12d   : > { %v885_v2 = vmul.f32 %v2537_v43, %v820_v30  ;;  %v2538_v39 = vmov %v2537_v43  ;;  %v891_v54 = vmul.f32 %v2539_v49, %v834_v19  ;;  %v2540_v7 = vmov %v2539_v49 }
 0x12e   : > { %v886_v48 = vmul.f32 %v2538_v39, %v826_v21  ;;  %v892_v4 = vmul.f32 %v2540_v7, %v840_v52  ;;  %v858_v5 = vadd.f32 %v856_v26, %v852_v34  ;;  %v875_v31 = vadd.f32 %v873_v1, %v869_v3  ;;  %s1159_s15 = sshll.u32 %s2541_s23, 3  ;;  %s1013_s16 = scalar_lea.sflag [#allocation5], %s2541_s23 }
 0x12f   : > { %v876_v55 = vadd.f32 %v874_v45, %v870_v35  ;;  %v887_v8 = vadd.f32 %v885_v2, %v881_v61  ;;  %v903_v25 = vmul.f32 %v2543_v62, %v820_v30  ;;  %v2544_v38 = vmov %v2543_v62  ;;  %s300_s3 = scalar_lea.vmem [#allocation11], %s1159_s15 }
 0x130   : > { %v888_v10 = vadd.f32 %v886_v48, %v882_v36  ;;  %v904_v40 = vmul.f32 %v2544_v38, %v826_v21  ;;  %v2545_v63 = vstv %s2535_s30  ;;  %v2547_v13 = vstv %s2536_s10  ;;  %s1029_s7 = sshll.u32 %s300_s3, 4  ;;  %s1030_s7 = int_to_ptr.vmem [resolvable:$true] %s1029_s7 }
 0x131   : > { %v909_v12 = vmul.f32 %v2545_v63, %v834_v19  ;;  %v2546_v33 = vmov %v2545_v63  ;;  %v915_v18 = vadd.f32 %v2547_v13, %v857_v6  ;;  %v2548_v53 = vmov %v2547_v13  ;;  %s1408_s9 = scalar_lea.vmem %s1030_s7, 128  ;;  %p1415_p4 = scmp.lt.s32.totalorder %s1030_s7, %s1413_s20 }
 0x132   : > { %v910_v56 = vmul.f32 %v2546_v33, %v840_v52  ;;  %v916_v11 = vadd.f32 %v2548_v53, %v858_v5  ;;  %v893_v23 = vadd.f32 %v891_v54, %v887_v8  ;;  %v894_v29 = vadd.f32 %v892_v4, %v888_v10  ;;  %p1409_p3 = scmp.ne.s32.totalorder %s1030_s7, %s1408_s9  ;;  %p1416_p5 = scmp.lt.s32.totalorder %s1414_s21, %s1408_s9 }
 0x133   : > { %v905_v20 = vadd.f32 %v903_v25, %v899_v51  ;;  %v906_v57 = vadd.f32 %v904_v40, %v900_v14  ;;  %v2549_v59 = vstv %s2542_s8  ;;  %v989_v21 = vstv %s2193_s24 }
 0x134   : > { %v919_v41 = vcombine.low %v915_v18, %v916_v11  ;;  %v942_v17 = vadd.f32 %v2549_v59, %v875_v31  ;;  %v2550_v37 = vmov %v2549_v59  ;;  %v966_v19 = vadd.f32 %v965_v27, %v893_v23  ;;  %p1410_p11 = pnand %p1409_p3, %p1646_p12  ;;  %p1417_p2 = por %p1416_p5, %p1415_p4 }
 0x135   : > { %v943_v30 = vadd.f32 %v2550_v37, %v876_v55  ;;  %v911_v61 = vadd.f32 %v909_v12, %v905_v20  ;;  %v912_v36 = vadd.f32 %v910_v56, %v906_v57  ;;  %v967_v52 = vadd.f32 %v965_v27, %v894_v29 }
 0x136   : > { %v926_v24 = vrot.slane %v919_v41, %v1914_v44  ;;  %v2552_v32 = vlaneseq  ;;  %p1411_p6 = pneg %p1410_p11 }
 0x137   : > { %v946_v42 = vcombine.low %v942_v17, %v943_v30  ;;  %v970_v14 = vcombine.low %v966_v19, %v967_v52  ;;  %v990_v0 = vadd.f32 %v989_v21, %v911_v61  ;;  %v991_v22 = vadd.f32 %v989_v21, %v912_v36 }
 0x138   : > { %vm2235_vm2 = vcmp.lt.s32.totalorder %v2552_v32, 256  ;;  %v933_v58 = vrot.slane %v926_v24, %v1914_v44  ;;  %p1418_p1 = pnand %p1417_p2, %p1411_p6 }
 0x139   : > { %v953_v60 = vrot.slane %v946_v42, %v1914_v44  ;;  %v977_v16 = vrot.slane %v970_v14, %v1914_v44  ;;  %v994_v28 = vcombine.low %v990_v0, %v991_v22 }
 0x13a   : > { %939 = vst.msk [vmem:[%s300_s3] ss:$4 sm:$0x3] %vm2235_vm2, %v933_v58 }
 0x13b   : > { %v960_v27 = vrot.slane %v953_v60, %v1914_v44  ;;  %v984_v9 = vrot.slane %v977_v16, %v1914_v44  ;;  %v1001_v15 = vrot.slane %v994_v28, %v1914_v44 }
 0x13d   : > { %1219 = vst.msk [vmem:[%s300_s3 + $0x1] ss:$4 sm:$0x3] %vm2235_vm2, %v960_v27  ;;  %1221 = vst.msk [vmem:[%s300_s3 + $0x2] ss:$4 sm:$0x3] %vm2235_vm2, %v984_v9  ;;  %v1008_v26 = vrot.slane %v1001_v15, %v1914_v44 }
 0x13f   : > { %1223 = vst.msk [vmem:[%s300_s3 + $0x3] ss:$4 sm:$0x3] %vm2235_vm2, %v1008_v26 }
 0x140   : > { %1421 = shalt.err (!%p1418_p1)
}
 0x141   : > { %s1422_s17 = scalar_lea.hbm %s1027_s13, 128  ;;  %s1426_s28 = scalar_lea.hbm %s2556_s14, 256 }
 0x142   : > { %p1423_p8 = scmp.ne.s32.totalorder %s1027_s13, %s1422_s17  ;;  %p1427_p10 = scmp.lt.s32.totalorder %s1027_s13, %s2556_s14 }
 0x143   : > { %p1428_p0 = scmp.lt.s32.totalorder %s1426_s28, %s1422_s17 }
 0x144   : > { %p1424_p13 = pnand %p1423_p8, %p1646_p12 }
 0x145   : > { %p1429_p9 = por %p1428_p0, %p1427_p10 }
 0x146   : > { %p1425_p7 = pneg %p1424_p13 }
 0x148   : > { %p1430_p3 = pnand %p1429_p9, %p1425_p7 }
 0x14a   : > { %1433 = shalt.err (!%p1430_p3)
}
 0x14b   : > { %1245 = dma.vmem_to_hbm [thread:$0]  (%p1646_p12), %s1030_s7, 128, %s1027_s13, %s1013_s16  }
 0x14c PF: > { %s2557_s22 = sld [smem:[#allocation16_spill]] }
 0x14d   : > { %s2558_s1 = sld [smem:[#allocation22_spill]] }
 0x14e   : > { %s2559_s2 = sld [smem:[#allocation21_spill]] }
 0x152   : > { %s1041_s5 = sand.u32 1, %s2557_s22  }
 0x153   : > { %p2560_p11 = scmp.ne.s32.totalorder %s2558_s1, 0  ;;  %s1042_s24 = scalar_lea.sflag [#allocation5], %s1041_s5 }
 0x154   : > { %p2561_p6 = scmp.ge.s32.totalorder %s2559_s2, 2 }
 0x156   : > { %p1262_p4 = pnand %p2561_p6, %p2560_p11 }
 0x158   : > { %p1263_p5 = pneg %p1262_p4 }
 0x15a   : > { %1471 = dma.done.wait (%p1263_p5), %s1042_s24, 128  }
 0x15b   : > { %1473 = vsyncadd (%p1263_p5), %s1042_s24, 4294967168  ;;  %s24_s25 = sadd.s32 1, %s2559_s2   ;;  %s2562_s20 = sld [smem:[#allocation17_spill]] }
 0x15c   : > { %p21_p2 = scmp.ge.s32.totalorder %s24_s25, 4   ;;  %s2563_s21 = sld [smem:[#allocation18_spill]] }
 0x15d   : > { %s2564_s22 = sld [smem:[#allocation25_spill]] }
 0x15e   : > { %s2565_s23 = sld [smem:[#allocation20_spill]]  ;;  %23 = sbr.rel (!%p21_p2) target bundleno = 15 (0xf), region = 101 }
 0x15f   : > { %s2566_s24 = sld [smem:[#allocation24_spill]] }
 0x163   :  { %1047 = vsyncpa [#allocation4], 1 }
 0x164   :  { %1049 = vsyncpa [#allocation4 + $0x1], 1 }
 0x165   :  { %1050 = vsyncpa [#allocation5], 1 }
 0x166   :  { %1052 = vsyncpa [#allocation5 + $0x1], 1 }
 0x167   :  { %1053 = vsyncpa [#allocation6], 1 }
 0x168   :  { %1055 = vsyncpa [#allocation6 + $0x1], 1 }
 0x169   :  { %1056 = vsyncpa [#allocation8], 1 }

</bundles_post_ra>
